<compile_context>
chip_gen: v7x
topology: tpu7x:2x2x1
jax: 0.10.0
libtpu: 0.0.40
codegen_flags: <defaults>
</compile_context>

<pallas_src>
import jax
import jax.numpy as jnp
from jax.experimental import pallas as pl
from jax.experimental.pallas import tpu as pltpu


# ---------------------------------------------------------------------------
# Parameter construction / quantization helpers
# ---------------------------------------------------------------------------

def _const_offsets(hid, z):
    """Lane-aligned offsets of the packed small-constants array."""
    zp = ((z + 127) // 128) * 128        # pad each Z-wide segment to 128 lanes
    o_b1 = 0
    o_b2mu = hid
    o_b2lv = hid + zp
    o_b3 = hid + 2 * zp
    o_s1 = 2 * hid + 2 * zp
    total = 3 * hid + 2 * zp
    return o_b1, o_b2mu, o_b2lv, o_b3, o_s1, total


def _quantize_int8(w):
    """Per-output-channel symmetric int8 quantization. w: (in, out) f32."""
    amax = jnp.max(jnp.abs(w), axis=0, keepdims=True)            # (1, out)
    scale = jnp.maximum(amax, 1e-8) / 127.0
    wq = jnp.clip(jnp.round(w / scale), -127.0, 127.0).astype(jnp.int8)
    return wq, scale.astype(jnp.float32)


def make_params(key, d_in, hidden, z_dim):
    """Deterministic synthetic weights (torch.nn.Linear-like fan-in scaling).

    Big weights (w1, w4) -> int8 + per-channel f32 scales (halves their DMA).
    Small heads (w2mu, w2lv, w3) -> bf16.  Biases / scales packed into one
    lane-aligned f32 array (except b4/s4 which are blocked along the D split).
    """
    assert hidden % 128 == 0, "hidden must be a multiple of 128 for lane-aligned packing"
    ks = jax.random.split(key, 10)

    def lin(kw, kb, fan_in, fan_out):
        s = 1.0 / jnp.sqrt(jnp.float32(fan_in))
        w = jax.random.uniform(kw, (fan_in, fan_out), jnp.float32, -s, s)
        b = jax.random.uniform(kb, (1, fan_out), jnp.float32, -s, s)
        return w, b

    w1, b1 = lin(ks[0], ks[1], d_in, hidden)        # encoder layer 1
    w2mu, b2mu = lin(ks[2], ks[3], hidden, z_dim)   # encoder head -> mu
    w2lv, b2lv = lin(ks[4], ks[5], hidden, z_dim)   # encoder head -> logvar
    w3, b3 = lin(ks[6], ks[7], z_dim, hidden)       # decoder layer 1
    w4, b4 = lin(ks[8], ks[9], hidden, d_in)        # decoder layer 2

    w1_q, s1 = _quantize_int8(w1)
    w4_q, s4 = _quantize_int8(w4)

    _, o_b2mu, o_b2lv, o_b3, o_s1, total = _const_offsets(hidden, z_dim)
    zp = o_b2lv - o_b2mu

    def lane_pad(v, width):
        return jnp.pad(v, ((0, 0), (0, width - v.shape[1])))

    consts = jnp.concatenate(
        [b1, lane_pad(b2mu, zp), lane_pad(b2lv, zp), b3, s1], axis=1)
    assert consts.shape == (1, total)

    return dict(
        w1=w1_q,                                   # (D, HID) int8
        w2mu=w2mu.astype(jnp.bfloat16),            # (HID, Z) bf16
        w2lv=w2lv.astype(jnp.bfloat16),            # (HID, Z) bf16
        w3=w3.astype(jnp.bfloat16),                # (Z, HID) bf16
        w4=w4_q,                                   # (HID, D) int8
        consts=consts,                             # (1, 3*HID + 2*pad128(Z)) f32
        b4=b4,                                     # (1, D) f32
        s4=s4,                                     # (1, D) f32
    )


# ---------------------------------------------------------------------------
# Fused forward
# ---------------------------------------------------------------------------

def vae_forward(x_nchw, eps, params, *, tile_b=8, tile_d=512):
    """Fused VAE forward. x_nchw: (B, C, H, W); eps: (B, Z) N(0,1) noise.

    Grid = (D // tile_d, B_pad // tile_b), both axes "parallel".  Encoder
    weights + packed constants use a constant index_map (resident across the
    whole grid); w4/b4/s4/out are blocked along the outer D axis so each v7x
    TensorCore moves half of the decoder weight and output.  For real batch
    sizes raise tile_b to 128-256 to fill MXU rows.
    """
    B, C, H, W = x_nchw.shape
    D = C * H * W
    Z = eps.shape[-1]

    w1, w2mu, w2lv, w3, w4 = (params["w1"], params["w2mu"], params["w2lv"],
                              params["w3"], params["w4"])
    consts, b4, s4 = params["consts"], params["b4"], params["s4"]
    HID = w1.shape[1]

    o_b1, o_b2mu, o_b2lv, o_b3, o_s1, ctot = _const_offsets(HID, Z)
    assert consts.shape == (1, ctot)

    # --- tiling -----------------------------------------------------------
    tile_b = max(8, (tile_b // 8) * 8)                 # sublane multiple
    B_pad = pl.cdiv(B, tile_b) * tile_b
    if tile_d % 128 != 0 or D % tile_d != 0:
        tile_d = D                                      # fall back: no D split
    d_tiles = D // tile_d
    b_tiles = B_pad // tile_b

    # --- wrapper-side prep: one fused pad per activation -------------------
    x_flat = x_nchw.reshape(B, D).astype(jnp.bfloat16)
    eps_f = eps.astype(jnp.float32)
    if B_pad != B:
        x_flat = jnp.pad(x_flat, ((0, B_pad - B), (0, 0)))
        eps_f = jnp.pad(eps_f, ((0, B_pad - B), (0, 0)))

    # --- kernel -------------------------------------------------------------
    def kernel(x_ref, eps_ref, w1_ref, w2mu_ref, w2lv_ref, w3_ref, w4_ref,
               consts_ref, b4_ref, s4_ref, out_ref):
        x = x_ref[...]                                             # (TB, D) bf16

        # unpack small constants (static, lane-aligned slice starts)
        b1 = consts_ref[:, o_b1:o_b1 + HID]
        b2mu = consts_ref[:, o_b2mu:o_b2mu + Z]
        b2lv = consts_ref[:, o_b2lv:o_b2lv + Z]
        b3 = consts_ref[:, o_b3:o_b3 + HID]
        s1 = consts_ref[:, o_s1:o_s1 + HID]

        # ---------------- encoder ----------------
        # int8 weight dequantized in VMEM; per-out-channel scale applied after
        # the dot so accumulation stays f32 on the bf16 MXU path.
        w1b = w1_ref[...].astype(jnp.bfloat16)
        h = jnp.dot(x, w1b, preferred_element_type=jnp.float32) * s1 + b1
        h = jnp.maximum(h, 0.0)                                    # ReLU (f32)
        h_bf = h.astype(jnp.bfloat16)

        mu = jnp.dot(h_bf, w2mu_ref[...],
                     preferred_element_type=jnp.float32) + b2mu     # (TB, Z)
        logvar = jnp.dot(h_bf, w2lv_ref[...],
                         preferred_element_type=jnp.float32) + b2lv

        # ------------- reparametrize --------------
        std = jnp.exp(0.5 * logvar)                                # EUP
        z = mu + eps_ref[...] * std                                # (TB, Z) f32

        # ---------------- decoder -----------------
        g = jnp.dot(z.astype(jnp.bfloat16), w3_ref[...],
                    preferred_element_type=jnp.float32) + b3
        g = jnp.maximum(g, 0.0)                                    # ReLU

        w4b = w4_ref[...].astype(jnp.bfloat16)                     # (HID, TD)
        logits = (jnp.dot(g.astype(jnp.bfloat16), w4b,
                          preferred_element_type=jnp.float32)
                  * s4_ref[...] + b4_ref[...])                      # (TB, TD)

        # sigmoid(decoder(z)); bf16 store halves the writeback, stays lane-dense
        out_ref[...] = jax.nn.sigmoid(logits).astype(out_ref.dtype)

    # --- specs --------------------------------------------------------------
    bmap = lambda j, i: (i, 0)      # batch-streamed, full feature width
    cmap = lambda j, i: (0, 0)      # resident weights / packed constants
    dmap = lambda j, i: (0, j)      # decoder-output-split tensors
    omap = lambda j, i: (i, j)

    in_specs = [
        pl.BlockSpec((tile_b, D), bmap),       # x
        pl.BlockSpec((tile_b, Z), bmap),       # eps
        pl.BlockSpec((D, HID), cmap),          # w1 (int8, resident)
        pl.BlockSpec((HID, Z), cmap),          # w2_mu (bf16, resident)
        pl.BlockSpec((HID, Z), cmap),          # w2_logvar (bf16, resident)
        pl.BlockSpec((Z, HID), cmap),          # w3 (bf16, resident)
        pl.BlockSpec((HID, tile_d), dmap),     # w4 (int8, split along D)
        pl.BlockSpec((1, ctot), cmap),         # packed b1/b2mu/b2lv/b3/scale1
        pl.BlockSpec((1, tile_d), dmap),       # b4 (split along D)
        pl.BlockSpec((1, tile_d), dmap),       # scale4 (split along D)
    ]
    out_spec = pl.BlockSpec((tile_b, tile_d), omap)

    out = pl.pallas_call(
        kernel,
        out_shape=jax.ShapeDtypeStruct((B_pad, D), jnp.bfloat16),
        grid=(d_tiles, b_tiles),
        in_specs=in_specs,
        out_specs=out_spec,
        compiler_params=pltpu.CompilerParams(
            # Both axes independent: shards across the two v7x TensorCores;
            # plain sequential loop on v5e/v6e.
            dimension_semantics=("parallel", "parallel"),
        ),
    )(x_flat, eps_f, w1, w2mu, w2lv, w3, w4, consts, b4, s4)

    # Drop batch padding and reshape reconstruction back to NCHW (bf16).
    return out[:B].reshape(B, C, H, W)


# ---------------------------------------------------------------------------
# Smoke test
# ---------------------------------------------------------------------------

if __name__ == "__main__":
    # Small shapes consistent with a conv-style VAE input: (B=2, C=4, H=16, W=16)
    B, C, Hs, Ws = 2, 4, 16, 16
    D = C * Hs * Ws          # 1024 flattened features
    HIDDEN = 256
    Z = 32

    key = jax.random.PRNGKey(0)
    k_x, k_eps, k_p = jax.random.split(key, 3)

    x = jax.random.normal(k_x, (B, C, Hs, Ws), jnp.float32)
    # deterministic N(0,1) noise for the reparametrization trick
    eps = jax.random.normal(k_eps, (B, Z), jnp.float32)
    params = make_params(k_p, D, HIDDEN, Z)

    recon = vae_forward(x, eps, params)
    recon = jax.block_until_ready(recon)

    assert recon.shape == (B, C, Hs, Ws)
    assert bool(jnp.all(jnp.isfinite(recon.astype(jnp.float32))))
    assert bool(jnp.all((recon >= 0.0) & (recon <= 1.0)))  # sigmoid range
    print("KERNEL_OK")
</pallas_src>

<mosaic_0001>
module attributes {stable_mosaic.version = 11 : i64} {
  func.func @kernel(%arg0: i32, %arg1: i32, %arg2: memref<8x1024xbf16, #tpu.memory_space<vmem>>, %arg3: memref<8x32xf32, #tpu.memory_space<vmem>>, %arg4: memref<1024x256xi8, #tpu.memory_space<vmem>>, %arg5: memref<256x32xbf16, #tpu.memory_space<vmem>>, %arg6: memref<256x32xbf16, #tpu.memory_space<vmem>>, %arg7: memref<32x256xbf16, #tpu.memory_space<vmem>>, %arg8: memref<256x512xi8, #tpu.memory_space<vmem>>, %arg9: memref<1x1024xf32, #tpu.memory_space<vmem>>, %arg10: memref<1x512xf32, #tpu.memory_space<vmem>>, %arg11: memref<1x512xf32, #tpu.memory_space<vmem>>, %arg12: memref<8x512xbf16, #tpu.memory_space<vmem>>) attributes {dimension_semantics = [#tpu.dimension_semantics<parallel>, #tpu.dimension_semantics<parallel>], iteration_bounds = array<i64: 2, 1>, scalar_prefetch = 0 : i64, scratch_operands = 0 : i64, tpu.core_type = #tpu.core_type<tc>, window_params = [{transform_indices = @transform_0, window_bounds = array<i64: 8, 1024>}, {transform_indices = @transform_1, window_bounds = array<i64: 8, 32>}, {pipeline_mode = #tpu.pipeline_mode<synchronous>, transform_indices = @transform_2, window_bounds = array<i64: 1024, 256>}, {pipeline_mode = #tpu.pipeline_mode<synchronous>, transform_indices = @transform_3, window_bounds = array<i64: 256, 32>}, {pipeline_mode = #tpu.pipeline_mode<synchronous>, transform_indices = @transform_4, window_bounds = array<i64: 256, 32>}, {pipeline_mode = #tpu.pipeline_mode<synchronous>, transform_indices = @transform_5, window_bounds = array<i64: 32, 256>}, {transform_indices = @transform_6, window_bounds = array<i64: 256, 512>}, {pipeline_mode = #tpu.pipeline_mode<synchronous>, transform_indices = @transform_7, window_bounds = array<i64: 1, 1024>}, {transform_indices = @transform_8, window_bounds = array<i64: 1, 512>}, {transform_indices = @transform_9, window_bounds = array<i64: 1, 512>}, {transform_indices = @transform_10, window_bounds = array<i64: 8, 512>}]} {
    %c0 = arith.constant 0 : index
    %c0_0 = arith.constant 0 : index
    %0 = vector.load %arg2[%c0, %c0_0] : memref<8x1024xbf16, #tpu.memory_space<vmem>>, vector<8x1024xbf16>
    %c0_1 = arith.constant 0 : index
    %c0_2 = arith.constant 0 : index
    %1 = vector.load %arg9[%c0_1, %c0_2] : memref<1x1024xf32, #tpu.memory_space<vmem>>, vector<1x256xf32>
    %c0_3 = arith.constant 0 : index
    %c256 = arith.constant 256 : index
    %2 = vector.load %arg9[%c0_3, %c256] : memref<1x1024xf32, #tpu.memory_space<vmem>>, vector<1x32xf32>
    %c0_4 = arith.constant 0 : index
    %c384 = arith.constant 384 : index
    %3 = vector.load %arg9[%c0_4, %c384] : memref<1x1024xf32, #tpu.memory_space<vmem>>, vector<1x32xf32>
    %c0_5 = arith.constant 0 : index
    %c512 = arith.constant 512 : index
    %4 = vector.load %arg9[%c0_5, %c512] : memref<1x1024xf32, #tpu.memory_space<vmem>>, vector<1x256xf32>
    %c0_6 = arith.constant 0 : index
    %c768 = arith.constant 768 : index
    %5 = vector.load %arg9[%c0_6, %c768] : memref<1x1024xf32, #tpu.memory_space<vmem>>, vector<1x256xf32>
    %c0_7 = arith.constant 0 : index
    %c0_8 = arith.constant 0 : index
    %6 = vector.load %arg4[%c0_7, %c0_8] : memref<1024x256xi8, #tpu.memory_space<vmem>>, vector<1024x256xi8>
    %7 = arith.sitofp %6 : vector<1024x256xi8> to vector<1024x256xbf16>
    %cst = arith.constant dense<0.000000e+00> : vector<8x256xf32>
    %8 = tpu.matmul %0, %7, %cst {dimension_numbers = #tpu.dot_dimension_numbers<[1], [0], [0], [1], [0, 0, 1, 1], [], []>} : vector<8x1024xbf16>, vector<1024x256xbf16>, vector<8x256xf32> -> vector<8x256xf32>
    %9 = vector.broadcast %5 : vector<1x256xf32> to vector<8x256xf32>
    %10 = arith.mulf %8, %9 : vector<8x256xf32>
    %11 = vector.broadcast %1 : vector<1x256xf32> to vector<8x256xf32>
    %12 = arith.addf %10, %11 : vector<8x256xf32>
    %cst_9 = arith.constant 0.000000e+00 : f32
    %13 = vector.broadcast %cst_9 : f32 to vector<8x256xf32>
    %14 = arith.maximumf %12, %13 : vector<8x256xf32>
    %15 = arith.truncf %14 : vector<8x256xf32> to vector<8x256xbf16>
    %c0_10 = arith.constant 0 : index
    %c0_11 = arith.constant 0 : index
    %16 = vector.load %arg5[%c0_10, %c0_11] : memref<256x32xbf16, #tpu.memory_space<vmem>>, vector<256x32xbf16>
    %cst_12 = arith.constant dense<0.000000e+00> : vector<8x32xf32>
    %17 = tpu.matmul %15, %16, %cst_12 {dimension_numbers = #tpu.dot_dimension_numbers<[1], [0], [0], [1], [0, 0, 1, 1], [], []>} : vector<8x256xbf16>, vector<256x32xbf16>, vector<8x32xf32> -> vector<8x32xf32>
    %18 = vector.broadcast %2 : vector<1x32xf32> to vector<8x32xf32>
    %19 = arith.addf %17, %18 : vector<8x32xf32>
    %c0_13 = arith.constant 0 : index
    %c0_14 = arith.constant 0 : index
    %20 = vector.load %arg6[%c0_13, %c0_14] : memref<256x32xbf16, #tpu.memory_space<vmem>>, vector<256x32xbf16>
    %cst_15 = arith.constant dense<0.000000e+00> : vector<8x32xf32>
    %21 = tpu.matmul %15, %20, %cst_15 {dimension_numbers = #tpu.dot_dimension_numbers<[1], [0], [0], [1], [0, 0, 1, 1], [], []>} : vector<8x256xbf16>, vector<256x32xbf16>, vector<8x32xf32> -> vector<8x32xf32>
    %22 = vector.broadcast %3 : vector<1x32xf32> to vector<8x32xf32>
    %23 = arith.addf %21, %22 : vector<8x32xf32>
    %cst_16 = arith.constant 5.000000e-01 : f32
    %24 = vector.broadcast %cst_16 : f32 to vector<8x32xf32>
    %25 = arith.mulf %24, %23 : vector<8x32xf32>
    %26 = math.exp %25 : vector<8x32xf32>
    %c0_17 = arith.constant 0 : index
    %c0_18 = arith.constant 0 : index
    %27 = vector.load %arg3[%c0_17, %c0_18] : memref<8x32xf32, #tpu.memory_space<vmem>>, vector<8x32xf32>
    %28 = arith.mulf %27, %26 : vector<8x32xf32>
    %29 = arith.addf %19, %28 : vector<8x32xf32>
    %30 = arith.truncf %29 : vector<8x32xf32> to vector<8x32xbf16>
    %c0_19 = arith.constant 0 : index
    %c0_20 = arith.constant 0 : index
    %31 = vector.load %arg7[%c0_19, %c0_20] : memref<32x256xbf16, #tpu.memory_space<vmem>>, vector<32x256xbf16>
    %cst_21 = arith.constant dense<0.000000e+00> : vector<8x256xf32>
    %32 = tpu.matmul %30, %31, %cst_21 {dimension_numbers = #tpu.dot_dimension_numbers<[1], [0], [0], [1], [0, 0, 1, 1], [], []>} : vector<8x32xbf16>, vector<32x256xbf16>, vector<8x256xf32> -> vector<8x256xf32>
    %33 = vector.broadcast %4 : vector<1x256xf32> to vector<8x256xf32>
    %34 = arith.addf %32, %33 : vector<8x256xf32>
    %cst_22 = arith.constant 0.000000e+00 : f32
    %35 = vector.broadcast %cst_22 : f32 to vector<8x256xf32>
    %36 = arith.maximumf %34, %35 : vector<8x256xf32>
    %c0_23 = arith.constant 0 : index
    %c0_24 = arith.constant 0 : index
    %37 = vector.load %arg8[%c0_23, %c0_24] : memref<256x512xi8, #tpu.memory_space<vmem>>, vector<256x512xi8>
    %38 = arith.sitofp %37 : vector<256x512xi8> to vector<256x512xbf16>
    %39 = arith.truncf %36 : vector<8x256xf32> to vector<8x256xbf16>
    %cst_25 = arith.constant dense<0.000000e+00> : vector<8x512xf32>
    %40 = tpu.matmul %39, %38, %cst_25 {dimension_numbers = #tpu.dot_dimension_numbers<[1], [0], [0], [1], [0, 0, 1, 1], [], []>} : vector<8x256xbf16>, vector<256x512xbf16>, vector<8x512xf32> -> vector<8x512xf32>
    %c0_26 = arith.constant 0 : index
    %c0_27 = arith.constant 0 : index
    %41 = vector.load %arg11[%c0_26, %c0_27] : memref<1x512xf32, #tpu.memory_space<vmem>>, vector<1x512xf32>
    %42 = vector.broadcast %41 : vector<1x512xf32> to vector<8x512xf32>
    %43 = arith.mulf %40, %42 : vector<8x512xf32>
    %c0_28 = arith.constant 0 : index
    %c0_29 = arith.constant 0 : index
    %44 = vector.load %arg10[%c0_28, %c0_29] : memref<1x512xf32, #tpu.memory_space<vmem>>, vector<1x512xf32>
    %45 = vector.broadcast %44 : vector<1x512xf32> to vector<8x512xf32>
    %46 = arith.addf %43, %45 : vector<8x512xf32>
    %47 = arith.negf %46 : vector<8x512xf32>
    %48 = math.exp %47 : vector<8x512xf32>
    %cst_30 = arith.constant 1.000000e+00 : f32
    %49 = vector.broadcast %cst_30 : f32 to vector<8x512xf32>
    %50 = arith.addf %49, %48 : vector<8x512xf32>
    %51 = arith.divf %49, %50 : vector<8x512xf32>
    %52 = arith.truncf %51 : vector<8x512xf32> to vector<8x512xbf16>
    %c0_31 = arith.constant 0 : index
    %c0_32 = arith.constant 0 : index
    %53 = vector.load %arg12[%c0_31, %c0_32] : memref<8x512xbf16, #tpu.memory_space<vmem>>, vector<8x512xbf16>
    tpu.vector_store %arg12[%c0_31, %c0_32], %52 {strides = array<i32>} : memref<8x512xbf16, #tpu.memory_space<vmem>>, vector<8x512xbf16>,
    return
  }
  func.func @transform_0(%arg0: i32, %arg1: i32) -> (i32, i32) {
    %c0_i32 = arith.constant 0 : i32
    %c0_i32_0 = arith.constant 0 : i32
    return %arg1, %c0_i32 : i32, i32
  }
  func.func @transform_1(%arg0: i32, %arg1: i32) -> (i32, i32) {
    %c0_i32 = arith.constant 0 : i32
    %c0_i32_0 = arith.constant 0 : i32
    return %arg1, %c0_i32 : i32, i32
  }
  func.func @transform_2(%arg0: i32, %arg1: i32) -> (i32, i32) {
    %c0_i32 = arith.constant 0 : i32
    %c0_i32_0 = arith.constant 0 : i32
    %c0_i32_1 = arith.constant 0 : i32
    return %c0_i32, %c0_i32_0 : i32, i32
  }
  func.func @transform_3(%arg0: i32, %arg1: i32) -> (i32, i32) {
    %c0_i32 = arith.constant 0 : i32
    %c0_i32_0 = arith.constant 0 : i32
    %c0_i32_1 = arith.constant 0 : i32
    return %c0_i32, %c0_i32_0 : i32, i32
  }
  func.func @transform_4(%arg0: i32, %arg1: i32) -> (i32, i32) {
    %c0_i32 = arith.constant 0 : i32
    %c0_i32_0 = arith.constant 0 : i32
    %c0_i32_1 = arith.constant 0 : i32
    return %c0_i32, %c0_i32_0 : i32, i32
  }
  func.func @transform_5(%arg0: i32, %arg1: i32) -> (i32, i32) {
    %c0_i32 = arith.constant 0 : i32
    %c0_i32_0 = arith.constant 0 : i32
    %c0_i32_1 = arith.constant 0 : i32
    return %c0_i32, %c0_i32_0 : i32, i32
  }
  func.func @transform_6(%arg0: i32, %arg1: i32) -> (i32, i32) {
    %c0_i32 = arith.constant 0 : i32
    %c0_i32_0 = arith.constant 0 : i32
    return %c0_i32, %arg0 : i32, i32
  }
  func.func @transform_7(%arg0: i32, %arg1: i32) -> (i32, i32) {
    %c0_i32 = arith.constant 0 : i32
    %c0_i32_0 = arith.constant 0 : i32
    %c0_i32_1 = arith.constant 0 : i32
    return %c0_i32, %c0_i32_0 : i32, i32
  }
  func.func @transform_8(%arg0: i32, %arg1: i32) -> (i32, i32) {
    %c0_i32 = arith.constant 0 : i32
    %c0_i32_0 = arith.constant 0 : i32
    return %c0_i32, %arg0 : i32, i32
  }
  func.func @transform_9(%arg0: i32, %arg1: i32) -> (i32, i32) {
    %c0_i32 = arith.constant 0 : i32
    %c0_i32_0 = arith.constant 0 : i32
    return %c0_i32, %arg0 : i32, i32
  }
  func.func @transform_10(%arg0: i32, %arg1: i32) -> (i32, i32) {
    %c0_i32 = arith.constant 0 : i32
    return %arg1, %arg0 : i32, i32
  }
}

</mosaic_0001>

<bundles_post_ra>
// kernel: tpu_custom_call.1
= control target key start
LH: loop header
LB: loop body
LE: loop exit
PB: predicated region body
PF: predicated region fallthrough
CT: control target
= control target key end

     0   :  { %s2715_s0 = inlined_call_operand.vmem [shape: bf16[8,1024], index: 0, kind: input, shape index: {}]   ;;  %s2716_s1 = inlined_call_operand.vmem [shape: f32[8,32], index: 1, kind: input, shape index: {}]   ;;  %s2717_s2 = inlined_call_operand.hbm [shape: s8[1024,256], index: 2, kind: input, shape index: {}]   ;;  %s2718_s3 = inlined_call_operand.vmem [shape: bf16[256,32], index: 3, kind: input, shape index: {}]   ;;  %s2719_s4 = inlined_call_operand.vmem [shape: bf16[256,32], index: 4, kind: input, shape index: {}]   ;;  %s2720_s5 = inlined_call_operand.vmem [shape: bf16[32,256], index: 5, kind: input, shape index: {}]   ;;  %s2721_s6 = inlined_call_operand.hbm [shape: s8[256,1024], index: 6, kind: input, shape index: {}]   ;;  %s2722_s7 = inlined_call_operand.vmem [shape: f32[1,1024], index: 7, kind: input, shape index: {}]   ;;  %s2723_s8 = inlined_call_operand.vmem [shape: f32[1,1024], index: 8, kind: input, shape index: {}]   ;;  %s2724_s9 = inlined_call_operand.vmem [shape: f32[1,1024], index: 9, kind: input, shape index: {}]   ;;  %s2725_s10 = inlined_call_operand.hbm [shape: bf16[8,1024], index: 10, kind: output, shape index: {}]  }
   0x1   :  { %2739 = sst [smem:[#allocation15_spill]] %s2723_s8 }
   0x2   :  { %2740 = sst [smem:[#allocation16_spill]] %s2725_s10 }
   0x3   :  { %15 = vsyncpa [#allocation3], 0 }
   0x4   :  { %16 = vsyncpa [#allocation6], 0 }
   0x5   :  { %18 = vsyncpa [#allocation6 + $0x1], 0 }
   0x6   :  { %19 = vsyncpa [#allocation4], 0 }
   0x7   :  { %21 = vsyncpa [#allocation4 + $0x1], 0  ;;  %s2264_s13 = smov 0   ;;  %s2266_s14 = smov 0  }
   0x8   :  { %s2268_s15 = smov 0   ;;  %s2270_s16 = smov 0  }
   0x9   :  { %s2272_s17 = smov 0   ;;  %s2274_s18 = smov 0  }
   0xa LB: > { %2741 = sst [smem:[#allocation11_spill]] %s2178_s13  ;;  %s1777_s19 = sadd.s32 4294967295, %s2198_s18   ;;  %s2198_s18 = sphi %s2274_s18, %s2771_s18   ;;  %s2194_s17 = sphi %s2272_s17, %s2770_s17   ;;  %s2190_s16 = sphi %s2270_s16, %s2769_s16   ;;  %s2186_s15 = sphi %s2268_s15, %s2768_s15   ;;  %s2182_s14 = sphi %s2266_s14, %s2767_s14   ;;  %s2178_s13 = sphi %s2264_s13, %s2766_s13  }
   0xb   : > { %2742 = sst [smem:[#allocation12_spill]] %s2198_s18  ;;  %s1778_s20 = sadd.s32 4294967294, %s2198_s18  }
   0xc   : > { %p189_p0 = scmp.ne.s32.totalorder %s2186_s15, %s2182_s14  ;;  %p190_p1 = scmp.eq.s32.totalorder %s2198_s18, 0 }
   0xd   : > { %p195_p2 = scmp.ne.s32.totalorder %s2182_s14, %s2178_s13  ;;  %p2301_p3 = scmp.eq.s32.totalorder %s1777_s19, 0 }
   0xe   : > { %p2305_p4 = por %p190_p1, %p189_p0  ;;  %p294_p5 = scmp.eq.s32.totalorder %s1777_s19, 1 }
   0xf   : > { %s2743_s21 = scalar_select %p2301_p3, 1, 0 }
  0x10   : > { %p2311_p6 = por %p2301_p3, %p195_p2  ;;  %p300_p7 = scmp.eq.s32.totalorder %s1778_s20, 1 }
  0x11   : > { %p2315_p8 = por %p294_p5, %p189_p0  ;;  %p1779_p9 = scmp.ge.s32.totalorder %s2198_s18, 1 }
  0x12   : > { %s2745_s23 = scalar_select %p2311_p6, 1, 0 }
  0x13   : > { %s2746_s24 = scalar_select %p2315_p8, 1, 0 }
  0x14   : > { %p2320_p10 = por %p300_p7, %p195_p2  ;;  %p307_p11 = scmp.lt.s32.totalorder %s2198_s18, 3 }
  0x15   : > { %2747 = sst [smem:[#allocation13_spill]] %s2746_s24  ;;  %s2200_s27 = smov [#allocation2]  }
  0x16   : > { %s2748_s25 = scalar_select %p2320_p10, 1, 0 }
  0x17   : > { %p2325_p12 = pnand %p1779_p9, %p307_p11  ;;  %s334_s28 = sshll.u32 %s2200_s27, 4  ;;  %s2329_s28 = int_to_ptr.vmem [resolvable:$true] %s334_s28 }
  0x18   : > { %2749 = sst [smem:[#allocation14_spill]] %s2748_s25  ;;  %p1932_p1 = scmp.lt.s32.totalorder %s2198_s18, 2 }
  0x19   : > { %s2750_s26 = scalar_select %p2325_p12, 1, 0 }
  0x1a   : > { %p1919_p13 = pneg %p2325_p12  ;;  %p2343_p2 = pnand %p1932_p1, %p2305_p4 }
  0x1b   : > { %s39_s11 = sadd.s32 1, %s2194_s17  ;;  %s2054_s20 = scalar_lea.hbm %s2717_s2, 8192 }
  0x1c   : > { %p2337_p5 = pnand %p1919_p13, %p2301_p3  ;;  %p2055_p7 = scmp.ne.s32.totalorder %s2717_s2, %s2054_s20 }
  0x1d   : > { %s2752_s30 = scalar_select %p2343_p2, 1, 0 }
  0x1e   : > { %p2056_p9 = pneg %p2337_p5  ;;  %p2061_p4 = scmp.lt.u32.totalorder %s2054_s20, %s2717_s2 }
  0x20   : > { %p2057_p11 = pnand %p2056_p9, %p2055_p7 }
  0x22   : > { %p2058_p13 = pneg %p2057_p11 }
  0x24   : > { %p2063_p1 = pnand %p2061_p4, %p2058_p13 }
  0x26   : > { %2066 = shalt.err (!%p2063_p1)
}
  0x27   : > { %s2067_s13 = scalar_lea.vmem %s2329_s28, 8192  ;;  %p2075_p6 = scmp.lt.s32.totalorder %s2329_s28, %s2329_s28 }
  0x28   : > { %p2068_p0 = scmp.ne.s32.totalorder %s2329_s28, %s2067_s13  ;;  %p2076_p3 = scmp.lt.s32.totalorder %s2067_s13, %s2067_s13 }
  0x2a   : > { %p2070_p10 = pnand %p2068_p0, %p2056_p9  ;;  %p2077_p12 = por %p2076_p3, %p2075_p6 }
  0x2c   : > { %p2071_p8 = pneg %p2070_p10 }
  0x2e   : > { %p2078_p2 = pnand %p2077_p12, %p2071_p8 }
  0x30   : > { %2081 = shalt.err (!%p2078_p2)
}
  0x31   : > { %s2201_s25 = smov 256   ;;  %s2202_s18 = smov 16  }
  0x32   : > { %1922 = dma.hbm_to_vmem [thread:$0]  (!%p2337_p5), %s2717_s2, 8192, %s2329_s28, [#allocation3], %s2201_s25, %s2201_s25, %s2202_s18  }
  0x33   : > { %p41_p10 = scmp.ge.s32.totalorder %s39_s11, 2  ;;  %s182_s13 = sadd.s32 1, %s2186_s15 }
  0x34   : > { %s360_s20 = sand.u32 1, %s2186_s15   ;;  %s1851_s10 = sshll.u32 %s2194_s17, 9 }
  0x35   : > { %s2773_s11 = smov (%p41_p10, %s39_s11), 0  ;;  %s1784_s27 = sshll.u32 %s360_s20, 8 }
  0x36   : > { %s179_s22 = ssub.s32 %s2194_s17, %s2773_s11  ;;  %s2379_s29 = scalar_lea.hbm %s2721_s6, %s1851_s10 }
  0x37   : > { %p180_p3 = scmp.eq.s32.totalorder %s179_s22, 0  ;;  %s364_s28 = scalar_lea.vmem [#allocation5], %s1784_s27 }
  0x38   : > { %s371_s25 = sshll.u32 %s364_s28, 4  ;;  %s2386_s12 = scalar_lea.sflag [#allocation6], %s360_s20  ;;  %s2384_s25 = int_to_ptr.vmem [resolvable:$true] %s371_s25 }
  0x39   : > { %s2382_s18 = scalar_select %p180_p3, %s2186_s15, %s182_s13  }
  0x3a   : > { %s2082_s19 = scalar_lea.hbm %s2379_s29, 4096  ;;  %p2753_p8 = scmp.ne.s32.totalorder %s2752_s30, 0 }
  0x3b   : > { %p2083_p6 = scmp.ne.s32.totalorder %s2379_s29, %s2082_s19  ;;  %s2087_s24 = scalar_lea.hbm %s2721_s6, 8192 }
  0x3c   : > { %p2084_p12 = pneg %p2753_p8  ;;  %p2088_p2 = scmp.lt.u32.totalorder %s2379_s29, %s2721_s6 }
  0x3d   : > { %p2089_p7 = scmp.lt.u32.totalorder %s2087_s24, %s2082_s19  ;;  %p2091_p11 = scmp.lt.u32.totalorder %s2082_s19, %s2379_s29 }
  0x3e   : > { %p2085_p0 = pnand %p2084_p12, %p2083_p6 }
  0x3f   : > { %p2090_p9 = por %p2089_p7, %p2088_p2 }
  0x40   : > { %p2086_p5 = pneg %p2085_p0 }
  0x41   : > { %p2092_p13 = por %p2091_p11, %p2090_p9 }
  0x43   : > { %p2093_p4 = pnand %p2092_p13, %p2086_p5 }
  0x45   : > { %2096 = shalt.err (!%p2093_p4)
}
  0x46   : > { %s2097_s13 = scalar_lea.vmem %s2384_s25, 4096  ;;  %s2203_s20 = smov [#allocation5]  }
  0x47   : > { %p2098_p1 = scmp.ne.s32.totalorder %s2384_s25, %s2097_s13  ;;  %s2102_s28 = sshll.u32 %s2203_s20, 4  ;;  %s2103_s28 = int_to_ptr.vmem [resolvable:$false] %s2102_s28 }
  0x48   : > { %s2104_s8 = scalar_lea.vmem %s2103_s28, 8192  ;;  %p2105_p6 = scmp.lt.s32.totalorder %s2384_s25, %s2103_s28 }
  0x49   : > { %p2100_p10 = pnand %p2098_p1, %p2084_p12  ;;  %p2106_p0 = scmp.lt.s32.totalorder %s2104_s8, %s2097_s13 }
  0x4b   : > { %p2101_p3 = pneg %p2100_p10  ;;  %p2107_p2 = por %p2106_p0, %p2105_p6 }
  0x4d   : > { %p2108_p7 = pnand %p2107_p2, %p2101_p3 }
  0x4f   : > { %2111 = shalt.err (!%p2108_p7)
}
  0x50   : > { %s2204_s19 = smov 1024   ;;  %s2205_s10 = smov 512  }
  0x51   : > { %s2206_s24 = smov 32   ;;  %p2754_p12 = scmp.ne.s32.totalorder %s2750_s26, 0 }
  0x52   : > { %1926 = dma.hbm_to_vmem [thread:$0]  (!%p2753_p8), %s2379_s29, 4096, %s2384_s25, %s2386_s12, %s2204_s19, %s2205_s10, %s2206_s24  }
  0x53   : > { %399 = sbr.rel (%p2754_p12) target bundleno = 1389 (0x56d), region = 60  ;;  %p2755_p5 = scmp.ne.s32.totalorder (!%p2754_p12), %s2743_s21, 0 }
  0x5a   : > { %2165 = dma.done.wait (%p2755_p5), [#allocation3], 8192  }
  0x5b   : > { %2167 = vsyncadd (%p2755_p5), [#allocation3], 4294959104  ;;  %s2421_s27 = sand.u32 1, %s2182_s14   ;;  %p2756_p8 = scmp.ne.s32.totalorder %s2745_s23, 0 }
  0x5c   : > { %s1789_s22 = sshll.u32 %s2421_s27, 8  ;;  %s406_s13 = scalar_lea.sflag [#allocation6], %s2421_s27 }
  0x5d   : > { %s2425_s20 = scalar_lea.vmem [#allocation5], %s1789_s22 }
  0x5e   : > { %2169 = dma.done.wait (%p2756_p8), %s406_s13, 4096  }
  0x5f   : > { %2171 = vsyncadd (%p2756_p8), %s406_s13, 4294963200  ;;  %v495_v0 = vld [vmem:[#allocation2 + $0x8] sm:$0xff]  ;;  %v494_v1 = vld [vmem:[#allocation2] sm:$0xff]  ;;  %vm1298_vm0 = vcmask 261120   ;;  %s1791_s8 = sshll.u32 %s2190_s16, 2  ;;  %s1790_s26 = sshll.u32 %s2421_s27, 4 }
  0x60   : > { %v559_v2 = vunpack.c.l.s8.bf16 %v495_v0  ;;  %v561_v3 = vunpack.c.h.s8.bf16 %v495_v0  ;;  %v558_v4 = vunpack.c.l.s8.bf16 %v494_v1  ;;  %v497_v5 = vld [vmem:[#allocation2 + $0x18] sm:$0xff]  ;;  %v560_v6 = vunpack.c.h.s8.bf16 %v494_v1  ;;  %v496_v8 = vld [vmem:[#allocation2 + $0x10] sm:$0xff]  ;;  %v2434_v9 = vld [vmem:[%s2715_s0] sm:$0xff]  ;;  %p474_p9 = scmp.lt.s32.totalorder %s1791_s8, 7  ;;  %s2655_s23 = scalar_lea.vmem [#allocation7], %s1790_s26 }
  0x61   : > { %v563_v7 = vunpack.c.l.s8.bf16 %v497_v5  ;;  %v562_v10 = vunpack.c.l.s8.bf16 %v496_v8  ;;  %v565_v11 = vunpack.c.h.s8.bf16 %v497_v5  ;;  %v1794_v12 = vcombine.high %v2434_v9, %v2434_v9  ;;  %v499_v13 = vld [vmem:[#allocation2 + $0x28] sm:$0xff]  ;;  %v498_v15 = vld [vmem:[#allocation2 + $0x20] sm:$0xff]  ;;  %v501_v19 = vld [vmem:[#allocation2 + $0x38] sm:$0xff]  ;;  %s2758_s30 = sld [smem:[#allocation13_spill]]  ;;  %s1854_s29 = sshll.u32 %s2190_s16, 8 }
  0x62   : > { %714 = vmatprep.subr.bf16.mxu0 %v559_v2  ;;  %v564_v14 = vunpack.c.h.s8.bf16 %v496_v8  ;;  %v567_v16 = vunpack.c.l.s8.bf16 %v499_v13  ;;  %v566_v17 = vunpack.c.l.s8.bf16 %v498_v15  ;;  %v569_v18 = vunpack.c.h.s8.bf16 %v499_v13  ;;  %v500_v20 = vld [vmem:[#allocation2 + $0x30] sm:$0xff]  ;;  %v503_v25 = vld [vmem:[#allocation2 + $0x48] sm:$0xff]  ;;  %v502_v26 = vld [vmem:[#allocation2 + $0x40] sm:$0xff]  ;;  %s2775_s8 = smov (!%p474_p9, %s1791_s8), 7  ;;  %s1636_s25 = sshll.u32 %s2655_s23, 4  ;;  %s2667_s25 = int_to_ptr.vmem [resolvable:$true] %s1636_s25 }
  0x63   : > { %715 = vmatpush1.bf16.msra.mxu0 %v558_v4  ;;  %746 = vmatprep.mubr.bf16.mxu0 %v1794_v12  ;;  %v568_v21 = vunpack.c.h.s8.bf16 %v498_v15  ;;  %v571_v22 = vunpack.c.l.s8.bf16 %v501_v19  ;;  %v570_v23 = vunpack.c.l.s8.bf16 %v500_v20  ;;  %v573_v24 = vunpack.c.h.s8.bf16 %v501_v19  ;;  %v505_v31 = vld [vmem:[#allocation2 + $0x58] sm:$0xff]  ;;  %v504_v34 = vld [vmem:[#allocation2 + $0x50] sm:$0xff]  ;;  %v507_v37 = vld [vmem:[#allocation2 + $0x68] sm:$0xff]  ;;  %s481_s24 = scalar_lea.vmem %s2724_s9, %s2775_s8  ;;  %s1620_s10 = scalar_lea.sflag [#allocation4], %s2421_s27 }
  0x64   : > { %716 = vmatprep.subr.bf16.mxu0 %v561_v3  ;;  %v572_v27 = vunpack.c.h.s8.bf16 %v500_v20  ;;  %v575_v28 = vunpack.c.l.s8.bf16 %v503_v25  ;;  %v574_v29 = vunpack.c.l.s8.bf16 %v502_v26  ;;  %v577_v30 = vunpack.c.h.s8.bf16 %v503_v25  ;;  %v506_v40 = vld [vmem:[#allocation2 + $0x60] sm:$0xff]  ;;  %v509_v43 = vld [vmem:[#allocation2 + $0x78] sm:$0xff]  ;;  %v508_v46 = vld [vmem:[#allocation2 + $0x70] sm:$0xff]  ;;  %s2208_s16 = smov [#allocation7]  }
  0x65   : > { %v576_v32 = vunpack.c.h.s8.bf16 %v502_v26  ;;  %v579_v33 = vunpack.c.l.s8.bf16 %v505_v31  ;;  %v578_v35 = vunpack.c.l.s8.bf16 %v504_v34  ;;  %v581_v36 = vunpack.c.h.s8.bf16 %v505_v31  ;;  %v511_v49 = vld [vmem:[#allocation2 + $0x88] sm:$0xff]  ;;  %v510_v52 = vld [vmem:[#allocation2 + $0x80] sm:$0xff]  ;;  %v513_v58 = vld [vmem:[#allocation2 + $0x98] sm:$0xff]  ;;  %s2116_s22 = sshll.u32 %s2208_s16, 4  ;;  %s2117_s22 = int_to_ptr.vmem [resolvable:$false] %s2116_s22 }
  0x66   : > { %v580_v38 = vunpack.c.h.s8.bf16 %v504_v34  ;;  %v583_v39 = vunpack.c.l.s8.bf16 %v507_v37  ;;  %v582_v41 = vunpack.c.l.s8.bf16 %v506_v40  ;;  %v585_v42 = vunpack.c.h.s8.bf16 %v507_v37  ;;  %v2441_v53 = vld [vmem:[%s2715_s0 + $0x8] sm:$0xff]  ;;  %v512_v61 = vld [vmem:[#allocation2 + $0x90] sm:$0xff]  ;;  %v514_v3 = vld [vmem:[#allocation2 + $0xa0] sm:$0xff]  ;;  %s2118_s13 = scalar_lea.vmem %s2117_s22, 512  ;;  %p2119_p10 = scmp.lt.s32.totalorder %s2667_s25, %s2117_s22 }
  0x67   : > { %717 = vmatpush1.bf16.msra.mxu0 %v560_v6  ;;  %v584_v44 = vunpack.c.h.s8.bf16 %v506_v40  ;;  %v587_v45 = vunpack.c.l.s8.bf16 %v509_v43  ;;  %v586_v47 = vunpack.c.l.s8.bf16 %v508_v46  ;;  %v589_v48 = vunpack.c.h.s8.bf16 %v509_v43  ;;  %v515_v0 = vld [vmem:[#allocation2 + $0xa8] sm:$0xff]  ;;  %v517_v6 = vld [vmem:[#allocation2 + $0xb8] sm:$0xff]  ;;  %v518_v15 = vld [vmem:[#allocation2 + $0xc0] sm:$0xff]  ;;  %p2760_p13 = scmp.ne.s32.totalorder %s2758_s30, 0 }
  0x68   : > { %718 = vmatprep.subr.bf16.mxu0 %v563_v7  ;;  %v588_v50 = vunpack.c.h.s8.bf16 %v508_v46  ;;  %v591_v51 = vunpack.c.l.s8.bf16 %v511_v49  ;;  %v1793_v54 = vcombine.low %v2434_v9, %v2434_v9  ;;  %v590_v55 = vunpack.c.l.s8.bf16 %v510_v52  ;;  %v516_v9 = vld [vmem:[#allocation2 + $0xb0] sm:$0xff]  ;;  %v519_v12 = vld [vmem:[#allocation2 + $0xc8] sm:$0xff]  ;;  %v1998_v46 = vld [vmem:[%s2718_s3 + $0x40] sm:$0xff]  }
  0x69   : > { %v1796_v56 = vcombine.high %v2441_v53, %v2441_v53  ;;  %v593_v57 = vunpack.c.h.s8.bf16 %v511_v49  ;;  %v592_v59 = vunpack.c.h.s8.bf16 %v510_v52  ;;  %v595_v60 = vunpack.c.l.s8.bf16 %v513_v58  ;;  %v2450_v40 = vld [vmem:[%s2715_s0 + $0x10] sm:$0xff]  ;;  %1855 = vmatprep.subr.bf16.mxu1 %v1998_v46  ;;  %v2001_v52 = vld [vmem:[%s2718_s3 + $0x8] sm:$0xff]  }
  0x6a   : > { %v594_v62 = vunpack.c.l.s8.bf16 %v512_v61  ;;  %v597_v63 = vunpack.c.h.s8.bf16 %v513_v58  ;;  %v596_v1 = vunpack.c.h.s8.bf16 %v512_v61  ;;  %v599_v2 = vunpack.c.l.s8.bf16 %v515_v0  ;;  %v2004_v58 = vld [vmem:[%s2718_s3 + $0x58] sm:$0xff]   ;;  %v530_v61 = vld [vmem:[#allocation2 + $0x120] sm:$0xff] }
  0x6b   : > { %719 = vmatpush1.bf16.msra.mxu0 %v562_v10  ;;  %v598_v4 = vunpack.c.l.s8.bf16 %v514_v3  ;;  %v601_v5 = vunpack.c.h.s8.bf16 %v515_v0  ;;  %v600_v7 = vunpack.c.h.s8.bf16 %v514_v3  ;;  %v603_v8 = vunpack.c.l.s8.bf16 %v517_v6  ;;  %v2007_v3 = vld [vmem:[%s2718_s3 + $0x20] sm:$0xff]  }
  0x6c   : > { %720 = vmatprep.subr.bf16.mxu0 %v565_v11  ;;  %v602_v10 = vunpack.c.l.s8.bf16 %v516_v9  ;;  %v605_v11 = vunpack.c.h.s8.bf16 %v517_v6  ;;  %v604_v13 = vunpack.c.h.s8.bf16 %v516_v9  ;;  %v608_v19 = vunpack.c.h.s8.bf16 %v518_v15 }
  0x6d   : > { %v1798_v43 = vcombine.high %v2450_v40, %v2450_v40  ;;  %v630_v0 = vunpack.c.l.s8.bf16 %v530_v61 }
  0x6f   : > { %721 = vmatpush1.bf16.msra.mxu0 %v564_v14  ;;  %v607_v14 = vunpack.c.l.s8.bf16 %v519_v12 }
  0x70   : > { %722 = vmatprep.subr.bf16.mxu0 %v567_v16  ;;  %v606_v16 = vunpack.c.l.s8.bf16 %v518_v15 }
  0x73   : > { %723 = vmatpush1.bf16.msra.mxu0 %v566_v17  ;;  %v609_v17 = vunpack.c.h.s8.bf16 %v519_v12 }
  0x74   : > { %724 = vmatprep.subr.bf16.mxu0 %v569_v18  ;;  %v521_v18 = vld [vmem:[#allocation2 + $0xd8] sm:$0xff] }
  0x75   : > { %v611_v20 = vunpack.c.l.s8.bf16 %v521_v18 }
  0x77   : > { %725 = vmatpush1.bf16.msra.mxu0 %v568_v21  ;;  %v520_v21 = vld [vmem:[#allocation2 + $0xd0] sm:$0xff] }
  0x78   : > { %726 = vmatprep.subr.bf16.mxu0 %v571_v22  ;;  %v610_v22 = vunpack.c.l.s8.bf16 %v520_v21  ;;  %v612_v25 = vunpack.c.h.s8.bf16 %v520_v21 }
  0x7b   : > { %727 = vmatpush1.bf16.msra.mxu0 %v570_v23  ;;  %v613_v23 = vunpack.c.h.s8.bf16 %v521_v18 }
  0x7c   : > { %728 = vmatprep.subr.bf16.mxu0 %v573_v24  ;;  %v523_v24 = vld [vmem:[#allocation2 + $0xe8] sm:$0xff] }
  0x7d   : > { %v615_v26 = vunpack.c.l.s8.bf16 %v523_v24 }
  0x7f   : > { %729 = vmatpush1.bf16.msra.mxu0 %v572_v27  ;;  %v522_v27 = vld [vmem:[#allocation2 + $0xe0] sm:$0xff] }
  0x80   : > { %730 = vmatprep.subr.bf16.mxu0 %v575_v28  ;;  %v614_v28 = vunpack.c.l.s8.bf16 %v522_v27  ;;  %v616_v31 = vunpack.c.h.s8.bf16 %v522_v27 }
  0x83   : > { %731 = vmatpush1.bf16.msra.mxu0 %v574_v29  ;;  %v617_v29 = vunpack.c.h.s8.bf16 %v523_v24 }
  0x84   : > { %732 = vmatprep.subr.bf16.mxu0 %v577_v30  ;;  %v525_v30 = vld [vmem:[#allocation2 + $0xf8] sm:$0xff] }
  0x87   : > { %733 = vmatpush1.bf16.msra.mxu0 %v576_v32  ;;  %v619_v32 = vunpack.c.l.s8.bf16 %v525_v30 }
  0x88   : > { %734 = vmatprep.subr.bf16.mxu0 %v579_v33  ;;  %v524_v33 = vld [vmem:[#allocation2 + $0xf0] sm:$0xff] }
  0x89   : > { %v618_v34 = vunpack.c.l.s8.bf16 %v524_v33  ;;  %v620_v37 = vunpack.c.h.s8.bf16 %v524_v33 }
  0x8b   : > { %735 = vmatpush1.bf16.msra.mxu0 %v578_v35  ;;  %v621_v35 = vunpack.c.h.s8.bf16 %v525_v30 }
  0x8c   : > { %736 = vmatprep.subr.bf16.mxu0 %v581_v36  ;;  %v527_v36 = vld [vmem:[#allocation2 + $0x108] sm:$0xff] }
  0x8f   : > { %737 = vmatpush1.bf16.msra.mxu0 %v580_v38  ;;  %v623_v38 = vunpack.c.l.s8.bf16 %v527_v36 }
  0x90   : > { %738 = vmatprep.subr.bf16.mxu0 %v583_v39  ;;  %v526_v39 = vld [vmem:[#allocation2 + $0x100] sm:$0xff] }
  0x91   : > { %v624_v49 = vunpack.c.h.s8.bf16 %v526_v39 }
  0x93   : > { %739 = vmatpush1.bf16.msra.mxu0 %v582_v41  ;;  %v1795_v41 = vcombine.low %v2441_v53, %v2441_v53  ;;  %v2002_v53 = vld [vmem:[%s2718_s3 + $0x50] sm:$0xff]  }
  0x94   : > { %740 = vmatprep.subr.bf16.mxu0 %v585_v42  ;;  %v622_v42 = vunpack.c.l.s8.bf16 %v526_v39  ;;  %v2495_v39 = vld [vmem:[%s2715_s0 + $0x18] sm:$0xff] }
  0x97   : > { %741 = vmatpush1.bf16.msra.mxu0 %v584_v44  ;;  %v625_v44 = vunpack.c.h.s8.bf16 %v527_v36 }
  0x98   : > { %742 = vmatprep.subr.bf16.mxu0 %v587_v45  ;;  %v529_v45 = vld [vmem:[#allocation2 + $0x118] sm:$0xff] }
  0x9b   : > { %743 = vmatpush1.bf16.msra.mxu0 %v586_v47  ;;  %v1999_v47 = vld [vmem:[%s2718_s3] sm:$0xff]  }
  0x9c   : > { %744 = vmatprep.subr.bf16.mxu0 %v589_v48  ;;  %v2000_v48 = vld [vmem:[%s2718_s3 + $0x48] sm:$0xff]   ;;  %1856 = vmatpush3.bf16.msra.mxu1 %v1999_v47 }
  0x9d   : > { %1857 = vmatprep.subr.bf16.mxu1 %v2000_v48  ;;  %v544_v48 = vld [vmem:[#allocation2 + $0x190] sm:$0xff] }
  0x9f   : > { %745 = vmatpush1.bf16.msra.mxu0 %v588_v50  ;;  %v627_v50 = vunpack.c.l.s8.bf16 %v529_v45 }
  0xa0   : > { %755 = vmatprep.subr.bf16.mxu0 %v591_v51  ;;  %v528_v51 = vld [vmem:[#allocation2 + $0x110] sm:$0xff]  ;;  %1858 = vmatpush3.bf16.msra.mxu1 %v2001_v52 }
  0xa1   : > { %1859 = vmatprep.subr.bf16.mxu1 %v2002_v53  ;;  %v546_v53 = vld [vmem:[#allocation2 + $0x1a0] sm:$0xff] }
  0xa2   : > { %747 = vmatmul.mubr.bf16.vlgmr.msra.gmra.mrb[0].mxu0 %v1793_v54  ;;  %v626_v54 = vunpack.c.l.s8.bf16 %v528_v51 }
  0xa3   : > { %756 = vmatpush1.bf16.msra.mxu0 %v590_v55  ;;  %787 = vmatprep.mubr.bf16.mxu0 %v1796_v56  ;;  %v629_v55 = vunpack.c.h.s8.bf16 %v529_v45  ;;  %v531_v56 = vld [vmem:[#allocation2 + $0x128] sm:$0xff]  ;;  %v545_v45 = vld [vmem:[#allocation2 + $0x198] sm:$0xff] }
  0xa4   : > { %757 = vmatprep.subr.bf16.mxu0 %v593_v57  ;;  %v2003_v57 = vld [vmem:[%s2718_s3 + $0x10] sm:$0xff]   ;;  %v659_v47 = vunpack.c.l.s8.bf16 %v545_v45 }
  0xa5   : > { %1860 = vmatpush3.bf16.msra.mxu1 %v2003_v57  ;;  %v664_v57 = vunpack.c.h.s8.bf16 %v546_v53 }
  0xa6   : > { %1861 = vmatprep.subr.bf16.mxu1 %v2004_v58 }
  0xa7   : > { %758 = vmatpush1.bf16.msra.mxu0 %v592_v59  ;;  %v628_v59 = vunpack.c.h.s8.bf16 %v528_v51  ;;  %v660_v51 = vunpack.c.h.s8.bf16 %v544_v48 }
  0xa8   : > { %759 = vmatprep.subr.bf16.mxu0 %v595_v60  ;;  %v631_v60 = vunpack.c.l.s8.bf16 %v531_v56 }
  0xab   : > { %760 = vmatpush1.bf16.msra.mxu0 %v594_v62  ;;  %v2005_v62 = vld [vmem:[%s2718_s3 + $0x18] sm:$0xff]  }
  0xac   : > { %761 = vmatprep.subr.bf16.mxu0 %v597_v63  ;;  %v2006_v63 = vld [vmem:[%s2718_s3 + $0x60] sm:$0xff]   ;;  %1862 = vmatpush3.bf16.msra.mxu1 %v2005_v62  ;;  %v551_v62 = vld [vmem:[#allocation2 + $0x1c8] sm:$0xff] }
  0xad   : > { %1863 = vmatprep.subr.bf16.mxu1 %v2006_v63 }
  0xaf   : > { %762 = vmatpush1.bf16.msra.mxu0 %v596_v1  ;;  %v633_v1 = vunpack.c.h.s8.bf16 %v531_v56  ;;  %v549_v56 = vld [vmem:[#allocation2 + $0x1b8] sm:$0xff] }
  0xb0   : > { %763 = vmatprep.subr.bf16.mxu0 %v599_v2  ;;  %v533_v2 = vld [vmem:[#allocation2 + $0x138] sm:$0xff]  ;;  %1864 = vmatpush3.bf16.msra.mxu1 %v2007_v3  ;;  %v667_v58 = vunpack.c.l.s8.bf16 %v549_v56  ;;  %v673_v3 = vunpack.c.h.s8.bf16 %v551_v62 }
  0xb1   : > { %v635_v6 = vunpack.c.l.s8.bf16 %v533_v2 }
  0xb3   : > { %764 = vmatpush1.bf16.msra.mxu0 %v598_v4  ;;  %v2008_v4 = vld [vmem:[%s2718_s3 + $0x68] sm:$0xff]  }
  0xb4   : > { %765 = vmatprep.subr.bf16.mxu0 %v601_v5  ;;  %v632_v5 = vunpack.c.h.s8.bf16 %v530_v61  ;;  %1865 = vmatprep.subr.bf16.mxu1 %v2008_v4  ;;  %v669_v61 = vunpack.c.h.s8.bf16 %v549_v56  ;;  %v553_v4 = vld [vmem:[#allocation2 + $0x1d8] sm:$0xff] }
  0xb5   : > { %v2020_v56 = vld [vmem:[%s2719_s4 + $0x58] sm:$0xff]  }
  0xb7   : > { %766 = vmatpush1.bf16.msra.mxu0 %v600_v7  ;;  %v532_v7 = vld [vmem:[#allocation2 + $0x130] sm:$0xff] }
  0xb8   : > { %767 = vmatprep.subr.bf16.mxu0 %v603_v8  ;;  %v2009_v8 = vld [vmem:[%s2718_s3 + $0x28] sm:$0xff]   ;;  %v634_v9 = vunpack.c.l.s8.bf16 %v532_v7  ;;  %v636_v12 = vunpack.c.h.s8.bf16 %v532_v7  ;;  %v552_v7 = vld [vmem:[#allocation2 + $0x1d0] sm:$0xff] }
  0xb9   : > { %1866 = vmatpush3.bf16.msra.mxu1 %v2009_v8  ;;  %v674_v8 = vunpack.c.l.s8.bf16 %v552_v7 }
  0xbb   : > { %768 = vmatpush1.bf16.msra.mxu0 %v602_v10  ;;  %v637_v10 = vunpack.c.h.s8.bf16 %v533_v2 }
  0xbc   : > { %769 = vmatprep.subr.bf16.mxu0 %v605_v11  ;;  %v535_v11 = vld [vmem:[#allocation2 + $0x148] sm:$0xff] }
  0xbf   : > { %770 = vmatpush1.bf16.msra.mxu0 %v604_v13  ;;  %v639_v13 = vunpack.c.l.s8.bf16 %v535_v11 }
  0xc0   : > { %771 = vmatprep.subr.bf16.mxu0 %v607_v14  ;;  %v534_v14 = vld [vmem:[#allocation2 + $0x140] sm:$0xff] }
  0xc1   : > { %v638_v15 = vunpack.c.l.s8.bf16 %v534_v14  ;;  %v640_v18 = vunpack.c.h.s8.bf16 %v534_v14 }
  0xc3   : > { %772 = vmatpush1.bf16.msra.mxu0 %v606_v16  ;;  %v641_v16 = vunpack.c.h.s8.bf16 %v535_v11  ;;  %v676_v11 = vunpack.c.h.s8.bf16 %v552_v7  ;;  %v1346_v7 = vld [vmem:[%s2425_s20 + $0x8] sm:$0xff] }
  0xc4   : > { %773 = vmatprep.subr.bf16.mxu0 %v609_v17  ;;  %v537_v17 = vld [vmem:[#allocation2 + $0x158] sm:$0xff] }
  0xc7   : > { %774 = vmatpush1.bf16.msra.mxu0 %v608_v19  ;;  %v643_v19 = vunpack.c.l.s8.bf16 %v537_v17 }
  0xc8   : > { %775 = vmatprep.subr.bf16.mxu0 %v611_v20  ;;  %v536_v20 = vld [vmem:[#allocation2 + $0x150] sm:$0xff] }
  0xc9   : > { %v642_v21 = vunpack.c.l.s8.bf16 %v536_v20  ;;  %v644_v24 = vunpack.c.h.s8.bf16 %v536_v20 }
  0xcb   : > { %776 = vmatpush1.bf16.msra.mxu0 %v610_v22  ;;  %v645_v22 = vunpack.c.h.s8.bf16 %v537_v17 }
  0xcc   : > { %777 = vmatprep.subr.bf16.mxu0 %v613_v23  ;;  %v539_v23 = vld [vmem:[#allocation2 + $0x168] sm:$0xff] }
  0xcf   : > { %778 = vmatpush1.bf16.msra.mxu0 %v612_v25  ;;  %v647_v25 = vunpack.c.l.s8.bf16 %v539_v23 }
  0xd0   : > { %779 = vmatprep.subr.bf16.mxu0 %v615_v26  ;;  %v538_v26 = vld [vmem:[#allocation2 + $0x160] sm:$0xff] }
  0xd1   : > { %v646_v27 = vunpack.c.l.s8.bf16 %v538_v26  ;;  %v648_v30 = vunpack.c.h.s8.bf16 %v538_v26  ;;  %v2012_v26 = vld [vmem:[%s2718_s3 + $0x78] sm:$0xff]  }
  0xd3   : > { %780 = vmatpush1.bf16.msra.mxu0 %v614_v28  ;;  %v649_v28 = vunpack.c.h.s8.bf16 %v539_v23  ;;  %v1799_v23 = vcombine.low %v2495_v39, %v2495_v39 }
  0xd4   : > { %781 = vmatprep.subr.bf16.mxu0 %v617_v29  ;;  %v541_v29 = vld [vmem:[#allocation2 + $0x178] sm:$0xff] }
  0xd7   : > { %782 = vmatpush1.bf16.msra.mxu0 %v616_v31  ;;  %v651_v31 = vunpack.c.l.s8.bf16 %v541_v29 }
  0xd8   : > { %783 = vmatprep.subr.bf16.mxu0 %v619_v32  ;;  %v540_v32 = vld [vmem:[#allocation2 + $0x170] sm:$0xff] }
  0xd9   : > { %v650_v33 = vunpack.c.l.s8.bf16 %v540_v32  ;;  %v652_v36 = vunpack.c.h.s8.bf16 %v540_v32  ;;  %v493_v32 = vld [vmem:[%s2722_s7 + $0x6] sm:$0x3] }
  0xdb   : > { %784 = vmatpush1.bf16.msra.mxu0 %v618_v34  ;;  %v653_v34 = vunpack.c.h.s8.bf16 %v541_v29  ;;  %v879_v29 = vlaneseq }
  0xdc   : > { %785 = vmatprep.subr.bf16.mxu0 %v621_v35  ;;  %v543_v35 = vld [vmem:[#allocation2 + $0x188] sm:$0xff] }
  0xdf   : > { %786 = vmatpush1.bf16.msra.mxu0 %v620_v37  ;;  %v655_v37 = vunpack.c.l.s8.bf16 %v543_v35 }
  0xe0   : > { %796 = vmatprep.subr.bf16.mxu0 %v623_v38  ;;  %v542_v38 = vld [vmem:[#allocation2 + $0x180] sm:$0xff] }
  0xe1   : > { %v656_v46 = vunpack.c.h.s8.bf16 %v542_v38 }
  0xe2   : > { %788 = vmatmul.mubr.bf16.vlgmr.msra.gmra.mrb[0].mxu0 %v1795_v41  ;;  %v1797_v41 = vcombine.low %v2450_v40, %v2450_v40  ;;  %v547_v40 = vld [vmem:[#allocation2 + $0x1a8] sm:$0xff] }
  0xe3   : > { %797 = vmatpush1.bf16.msra.mxu0 %v622_v42  ;;  %828 = vmatprep.mubr.bf16.mxu0 %v1798_v43  ;;  %v654_v42 = vunpack.c.l.s8.bf16 %v542_v38  ;;  %v1800_v43 = vcombine.high %v2495_v39, %v2495_v39  ;;  %v663_v52 = vunpack.c.l.s8.bf16 %v547_v40 }
  0xe4   : > { %798 = vmatprep.subr.bf16.mxu0 %v625_v44  ;;  %v657_v44 = vunpack.c.h.s8.bf16 %v543_v35 }
  0xe7   : > { %799 = vmatpush1.bf16.msra.mxu0 %v624_v49  ;;  %v658_v49 = vunpack.c.l.s8.bf16 %v544_v48 }
  0xe8   : > { %800 = vmatprep.subr.bf16.mxu0 %v627_v50  ;;  %v661_v50 = vunpack.c.h.s8.bf16 %v545_v45 }
  0xeb   : > { %801 = vmatpush1.bf16.msra.mxu0 %v626_v54  ;;  %v662_v54 = vunpack.c.l.s8.bf16 %v546_v53  ;;  %v2017_v53 = vld [vmem:[%s2719_s4 + $0x8] sm:$0xff]  }
  0xec   : > { %802 = vmatprep.subr.bf16.mxu0 %v629_v55  ;;  %v665_v55 = vunpack.c.h.s8.bf16 %v547_v40  ;;  %v2015_v40 = vld [vmem:[%s2719_s4] sm:$0xff]  }
  0xef   : > { %803 = vmatpush1.bf16.msra.mxu0 %v628_v59  ;;  %v548_v59 = vld [vmem:[#allocation2 + $0x1b0] sm:$0xff] }
  0xf0   : > { %804 = vmatprep.subr.bf16.mxu0 %v631_v60  ;;  %v666_v60 = vunpack.c.l.s8.bf16 %v548_v59  ;;  %v668_v63 = vunpack.c.h.s8.bf16 %v548_v59  ;;  %v2023_v59 = vld [vmem:[%s2719_s4 + $0x20] sm:$0xff]  }
  0xf3   : > { %805 = vmatpush1.bf16.msra.mxu0 %v630_v0  ;;  %v671_v0 = vunpack.c.l.s8.bf16 %v551_v62  ;;  %v2026_v62 = vld [vmem:[%s2719_s4 + $0x70] sm:$0xff]  }
  0xf4   : > { %806 = vmatprep.subr.bf16.mxu0 %v633_v1  ;;  %v550_v1 = vld [vmem:[#allocation2 + $0x1c0] sm:$0xff] }
  0xf5   : > { %v670_v2 = vunpack.c.l.s8.bf16 %v550_v1 }
  0xf7   : > { %807 = vmatpush1.bf16.msra.mxu0 %v632_v5  ;;  %v672_v5 = vunpack.c.h.s8.bf16 %v550_v1  ;;  %v2029_v1 = vld [vmem:[%s2719_s4 + $0x38] sm:$0xff]  }
  0xf8   : > { %808 = vmatprep.subr.bf16.mxu0 %v635_v6  ;;  %v675_v6 = vunpack.c.l.s8.bf16 %v553_v4 }
  0xfb   : > { %809 = vmatpush1.bf16.msra.mxu0 %v634_v9  ;;  %v677_v9 = vunpack.c.h.s8.bf16 %v553_v4  ;;  %v2035_v4 = vld [vmem:[%s2720_s5 + $0x14] ss:$8 sps:$4 sm:$0xff]  }
  0xfc   : > { %810 = vmatprep.subr.bf16.mxu0 %v637_v10  ;;  %v555_v10 = vld [vmem:[#allocation2 + $0x1e8] sm:$0xff] }
  0xff   : > { %811 = vmatpush1.bf16.msra.mxu0 %v636_v12  ;;  %v679_v12 = vunpack.c.l.s8.bf16 %v555_v10 }
 0x100   : > { %812 = vmatprep.subr.bf16.mxu0 %v639_v13  ;;  %v554_v13 = vld [vmem:[#allocation2 + $0x1e0] sm:$0xff] }
 0x101   : > { %v678_v14 = vunpack.c.l.s8.bf16 %v554_v13  ;;  %v680_v17 = vunpack.c.h.s8.bf16 %v554_v13 }
 0x103   : > { %813 = vmatpush1.bf16.msra.mxu0 %v638_v15  ;;  %v681_v15 = vunpack.c.h.s8.bf16 %v555_v10 }
 0x104   : > { %814 = vmatprep.subr.bf16.mxu0 %v641_v16  ;;  %v557_v16 = vld [vmem:[#allocation2 + $0x1f8] sm:$0xff] }
 0x107   : > { %815 = vmatpush1.bf16.msra.mxu0 %v640_v18  ;;  %v683_v18 = vunpack.c.l.s8.bf16 %v557_v16 }
 0x108   : > { %816 = vmatprep.subr.bf16.mxu0 %v643_v19  ;;  %v556_v19 = vld [vmem:[#allocation2 + $0x1f0] sm:$0xff] }
 0x109   : > { %v682_v20 = vunpack.c.l.s8.bf16 %v556_v19 }
 0x10b   : > { %817 = vmatpush1.bf16.msra.mxu0 %v642_v21  ;;  %v685_v21 = vunpack.c.h.s8.bf16 %v557_v16 }
 0x10c   : > { %818 = vmatprep.subr.bf16.mxu0 %v645_v22  ;;  %v684_v22 = vunpack.c.h.s8.bf16 %v556_v19 }
 0x10f   : > { %819 = vmatpush1.bf16.msra.mxu0 %v644_v24  ;;  %v2010_v24 = vld [vmem:[%s2718_s3 + $0x70] sm:$0xff]  }
 0x110   : > { %820 = vmatprep.subr.bf16.mxu0 %v647_v25  ;;  %v2011_v25 = vld [vmem:[%s2718_s3 + $0x30] sm:$0xff]   ;;  %1867 = vmatprep.subr.bf16.mxu1 %v2010_v24  ;;  %v1259_v24 = vld [vmem:[%s2716_s1] sm:$0xff] }
 0x111   : > { %1868 = vmatpush3.bf16.msra.mxu1 %v2011_v25 }
 0x112   : > { %1869 = vmatprep.subr.bf16.mxu1 %v2012_v26 }
 0x113   : > { %821 = vmatpush1.bf16.msra.mxu0 %v646_v27  ;;  %v2013_v27 = vld [vmem:[%s2718_s3 + $0x38] sm:$0xff]  }
 0x114   : > { %822 = vmatprep.subr.bf16.mxu0 %v649_v28  ;;  %v2014_v28 = vld [vmem:[%s2719_s4 + $0x40] sm:$0xff]  }
 0x115   : > { %1870 = vmatpush3.bf16.msra.mxu1 %v2013_v27 }
 0x116   : > { %1877 = vmatprep.subr.bf16.mxu1 %v2014_v28  ;;  %v1345_v28 = vld [vmem:[%s2425_s20] sm:$0xff] }
 0x117   : > { %823 = vmatpush1.bf16.msra.mxu0 %v648_v30  ;;  %v2518_v30 = vshrl.u32 %v879_v29, 7 }
 0x118   : > { %824 = vmatprep.subr.bf16.mxu0 %v651_v31 }
 0x119   : > { %v2521_v31 = vsub.s32 0, %v2518_v30 }
 0x11b   : > { %825 = vmatpush1.bf16.msra.mxu0 %v650_v33  ;;  %v2527_v33 = vsub.s32 1, %v2518_v30  ;;  %v882_v35 = vrot.slane %v493_v32, %v2521_v31 }
 0x11c   : > { %826 = vmatprep.subr.bf16.mxu0 %v653_v34  ;;  %v489_v34 = vld [vmem:[%s2722_s7] sm:$0x3] }
 0x11d   : > { %v899_v39 = vrot.slane %v489_v34, %v2527_v33 }
 0x11f   : > { %827 = vmatpush1.bf16.msra.mxu0 %v652_v36  ;;  %v886_v36 = vrot.slane %v493_v32, %v2527_v33  ;;  %v1377_v32 = vunpack.c.l.s8.bf16 %v1345_v28 }
 0x120   : > { %837 = vmatprep.subr.bf16.mxu0 %v655_v37  ;;  %v895_v37 = vrot.slane %v489_v34, %v2521_v31 }
 0x122   : > { %829 = vmatmul.mubr.bf16.vlgmr.msra.gmra.mrb[0].mxu0 %v1797_v41 }
 0x123   : > { %838 = vmatpush1.bf16.msra.mxu0 %v654_v42  ;;  %869 = vmatprep.mubr.bf16.mxu0 %v1800_v43 }
 0x124   : > { %839 = vmatprep.subr.bf16.mxu0 %v657_v44 }
 0x127   : > { %840 = vmatpush1.bf16.msra.mxu0 %v656_v46 }
 0x128   : > { %841 = vmatprep.subr.bf16.mxu0 %v659_v47 }
 0x12b   : > { %842 = vmatpush1.bf16.msra.mxu0 %v658_v49 }
 0x12c   : > { %843 = vmatprep.subr.bf16.mxu0 %v661_v50 }
 0x12f   : > { %844 = vmatpush1.bf16.msra.mxu0 %v660_v51 }
 0x130   : > { %845 = vmatprep.subr.bf16.mxu0 %v663_v52  ;;  %v2016_v52 = vld [vmem:[%s2719_s4 + $0x48] sm:$0xff]  }
 0x133   : > { %846 = vmatpush1.bf16.msra.mxu0 %v662_v54  ;;  %v2018_v54 = vld [vmem:[%s2719_s4 + $0x50] sm:$0xff]  }
 0x134   : > { %847 = vmatprep.subr.bf16.mxu0 %v665_v55  ;;  %v2019_v55 = vld [vmem:[%s2719_s4 + $0x10] sm:$0xff]  }
 0x137   : > { %848 = vmatpush1.bf16.msra.mxu0 %v664_v57  ;;  %v2021_v57 = vld [vmem:[%s2719_s4 + $0x18] sm:$0xff]  }
 0x138   : > { %849 = vmatprep.subr.bf16.mxu0 %v667_v58  ;;  %v2022_v58 = vld [vmem:[%s2719_s4 + $0x60] sm:$0xff]  }
 0x13b   : > { %850 = vmatpush1.bf16.msra.mxu0 %v666_v60  ;;  %v2024_v60 = vld [vmem:[%s2719_s4 + $0x68] sm:$0xff]  }
 0x13c   : > { %851 = vmatprep.subr.bf16.mxu0 %v669_v61  ;;  %v2025_v61 = vld [vmem:[%s2719_s4 + $0x28] sm:$0xff]  }
 0x13f   : > { %852 = vmatpush1.bf16.msra.mxu0 %v668_v63  ;;  %v2027_v63 = vld [vmem:[%s2719_s4 + $0x30] sm:$0xff]  }
 0x140   : > { %853 = vmatprep.subr.bf16.mxu0 %v671_v0  ;;  %v2028_v0 = vld [vmem:[%s2719_s4 + $0x78] sm:$0xff]  }
 0x143   : > { %854 = vmatpush1.bf16.msra.mxu0 %v670_v2  ;;  %v2030_v2 = vld [vmem:[%s2720_s5] ss:$8 sps:$4 sm:$0xff]  }
 0x144   : > { %855 = vmatprep.subr.bf16.mxu0 %v673_v3  ;;  %v2032_v3 = vld [vmem:[%s2720_s5 + $0x4] ss:$8 sps:$4 sm:$0xff]  }
 0x147   : > { %856 = vmatpush1.bf16.msra.mxu0 %v672_v5  ;;  %v2207_v5 = vmov 0  }
 0x148   : > { %857 = vmatprep.subr.bf16.mxu0 %v675_v6  ;;  %v2033_v6 = vld [vmem:[%s2720_s5 + $0x10] ss:$8 sps:$4 sm:$0xff]  }
 0x14b   : > { %858 = vmatpush1.bf16.msra.mxu0 %v674_v8  ;;  %v1378_v8 = vunpack.c.l.s8.bf16 %v1346_v7 }
 0x14c   : > { %859 = vmatprep.subr.bf16.mxu0 %v677_v9 }
 0x14f   : > { %860 = vmatpush1.bf16.msra.mxu0 %v676_v11 }
 0x150   : > { %861 = vmatprep.subr.bf16.mxu0 %v679_v12 }
 0x153   : > { %862 = vmatpush1.bf16.msra.mxu0 %v678_v14 }
 0x154   : > { %863 = vmatprep.subr.bf16.mxu0 %v681_v15  ;;  %v1818_v15 = vld [vmem:[%s2722_s7 + $0x3] ss:$0 sm:$0xff] }
 0x157   : > { %864 = vmatpush1.bf16.msra.mxu0 %v680_v17 }
 0x158   : > { %865 = vmatprep.subr.bf16.mxu0 %v683_v18 }
 0x15b   : > { %866 = vmatpush1.bf16.msra.mxu0 %v682_v20 }
 0x15c   : > { %867 = vmatprep.subr.bf16.mxu0 %v685_v21 }
 0x15f   : > { %868 = vmatpush1.bf16.msra.mxu0 %v684_v22 }
 0x162   : > { %870 = vmatmul.mubr.bf16.vlgmr.msra.gmra.mrb[0].mxu0 %v1799_v23  ;;  %v1801_v23 = vld [vmem:[%s2722_s7 + $0x2] ss:$0 sm:$0xff] }
 0x235   : > { %v871_v38 = vpop.f32.mrb[0].mxu0 }
 0x236   : > { %v889_v41 = vmul.f32 %v882_v35, %v871_v38  ;;  %v873_v42 = vpop.f32.mrb[1].mxu0  ;;  %v1382_v35 = vunpack.c.h.s8.bf16 %v1346_v7 }
 0x237   : > { %v890_v43 = vmul.f32 %v886_v36, %v873_v42  ;;  %v875_v44 = vpop.f32.mrb[2].mxu0  ;;  %v1350_v36 = vld [vmem:[%s2425_s20 + $0x28] sm:$0xff] }
 0x238   : > { %v902_v45 = vadd.f32 %v895_v37, %v889_v41  ;;  %v876_v46 = vpop.f32.mrb[3].mxu0  ;;  %v1381_v37 = vunpack.c.h.s8.bf16 %v1345_v28  ;;  %v1386_v38 = vunpack.c.l.s8.bf16 %v1350_v36  ;;  %v1390_v42 = vunpack.c.h.s8.bf16 %v1350_v36  ;;  %v1352_v36 = vld [vmem:[%s2425_s20 + $0x38] sm:$0xff] }
 0x239   : > { %v903_v47 = vadd.f32 %v899_v39, %v890_v43  ;;  %v1349_v39 = vld [vmem:[%s2425_s20 + $0x20] sm:$0xff]  ;;  %v1354_v43 = vld [vmem:[%s2425_s20 + $0x48] sm:$0xff] }
 0x23a   : > { %v904_v48 = vmax.f32 %v902_v45, 0.0  ;;  %v1385_v41 = vunpack.c.l.s8.bf16 %v1349_v39  ;;  %v1389_v44 = vunpack.c.h.s8.bf16 %v1349_v39  ;;  %v1394_v45 = vunpack.c.l.s8.bf16 %v1354_v43  ;;  %v1353_v46 = vld [vmem:[%s2425_s20 + $0x40] sm:$0xff]  ;;  %v1351_v39 = vld [vmem:[%s2425_s20 + $0x30] sm:$0xff] }
 0x23b   : > { %v905_v49 = vmax.f32 %v903_v47, 0.0  ;;  %v1393_v47 = vunpack.c.l.s8.bf16 %v1353_v46 }
 0x23c   : > { %v906_v51 = vpack.c.bf16 %v904_v48, %v904_v48  ;;  %v1398_v48 = vunpack.c.h.s8.bf16 %v1354_v43  ;;  %v1356_v43 = vld [vmem:[%s2425_s20 + $0x58] sm:$0xff] }
 0x23d   : > { %v907_v50 = vpack.c.bf16 %v905_v49, %v905_v49  ;;  %v1358_v49 = vld [vmem:[%s2425_s20 + $0x68] sm:$0xff] }
 0x23f   : > { %1074 = vmatprep.mubr.bf16.mxu1 %v907_v50 }
 0x240   : > { %1075 = vmatmul.mubr.bf16.vlgmr.msra.gmra.mrb[0].mxu1 %v906_v51 }
 0x241   : > { %1878 = vmatpush3.bf16.msra.mxu1 %v2015_v40  ;;  %1248 = vmatprep.mubr.bf16.mxu1 %v907_v50  ;;  %v1397_v50 = vunpack.c.h.s8.bf16 %v1353_v46  ;;  %v1402_v40 = vunpack.c.l.s8.bf16 %v1358_v49  ;;  %v1355_v46 = vld [vmem:[%s2425_s20 + $0x50] sm:$0xff] }
 0x242   : > { %1879 = vmatprep.subr.bf16.mxu1 %v2016_v52 }
 0x245   : > { %1880 = vmatpush3.bf16.msra.mxu1 %v2017_v53  ;;  %v1406_v53 = vunpack.c.h.s8.bf16 %v1358_v49  ;;  %v1360_v49 = vld [vmem:[%s2425_s20 + $0x78] sm:$0xff] }
 0x246   : > { %1881 = vmatprep.subr.bf16.mxu1 %v2018_v54  ;;  %v1362_v54 = vld [vmem:[%s2425_s20 + $0x88] sm:$0xff] }
 0x249   : > { %1882 = vmatpush3.bf16.msra.mxu1 %v2019_v55 }
 0x24a   : > { %1883 = vmatprep.subr.bf16.mxu1 %v2020_v56  ;;  %v1410_v56 = vunpack.c.l.s8.bf16 %v1362_v54 }
 0x24d   : > { %1884 = vmatpush3.bf16.msra.mxu1 %v2021_v57  ;;  %v1361_v57 = vld [vmem:[%s2425_s20 + $0x80] sm:$0xff] }
 0x24e   : > { %1885 = vmatprep.subr.bf16.mxu1 %v2022_v58  ;;  %v1409_v58 = vunpack.c.l.s8.bf16 %v1361_v57 }
 0x251   : > { %1886 = vmatpush3.bf16.msra.mxu1 %v2023_v59  ;;  %v1414_v59 = vunpack.c.h.s8.bf16 %v1362_v54  ;;  %v1364_v54 = vld [vmem:[%s2425_s20 + $0x98] sm:$0xff] }
 0x252   : > { %1887 = vmatprep.subr.bf16.mxu1 %v2024_v60  ;;  %v1366_v60 = vld [vmem:[%s2425_s20 + $0xa8] sm:$0xff] }
 0x255   : > { %1888 = vmatpush3.bf16.msra.mxu1 %v2025_v61  ;;  %v1413_v61 = vunpack.c.h.s8.bf16 %v1361_v57  ;;  %v1363_v57 = vld [vmem:[%s2425_s20 + $0x90] sm:$0xff] }
 0x256   : > { %1889 = vmatprep.subr.bf16.mxu1 %v2026_v62  ;;  %v1418_v62 = vunpack.c.l.s8.bf16 %v1366_v60 }
 0x259   : > { %1890 = vmatpush3.bf16.msra.mxu1 %v2027_v63  ;;  %v1365_v63 = vld [vmem:[%s2425_s20 + $0xa0] sm:$0xff] }
 0x25a   : > { %1891 = vmatprep.subr.bf16.mxu1 %v2028_v0  ;;  %v1417_v0 = vunpack.c.l.s8.bf16 %v1365_v63 }
 0x25d   : > { %1892 = vmatpush3.bf16.msra.mxu1 %v2029_v1  ;;  %v1422_v1 = vunpack.c.h.s8.bf16 %v1366_v60  ;;  %v1368_v60 = vld [vmem:[%s2425_s20 + $0xb8] sm:$0xff] }
 0x25e   : > { %1302 = vmatprep.subr.bf16.mxu1 %v2032_v3  ;;  %v1421_v3 = vunpack.c.h.s8.bf16 %v1365_v63  ;;  %v1367_v63 = vld [vmem:[%s2425_s20 + $0xb0] sm:$0xff] }
 0x260   : > { %1249 = vmatmul.mubr.bf16.vlgmr.msra.gmra.mrb[4].mxu1 %v906_v51  ;;  %v1357_v51 = vld [vmem:[%s2425_s20 + $0x60] sm:$0xff] }
 0x261   : > { %1334 = vmatprep.mubr.bf16.mxu1 %v2207_v5  ;;  %1303 = vmatpush1.bf16.msra.mxu1 %v2030_v2  ;;  %v1401_v52 = vunpack.c.l.s8.bf16 %v1357_v51  ;;  %v1405_v55 = vunpack.c.h.s8.bf16 %v1357_v51  ;;  %v1370_v2 = vld [vmem:[%s2425_s20 + $0xc8] sm:$0xff]  ;;  %v1369_v5 = vld [vmem:[%s2425_s20 + $0xc0] sm:$0xff]  ;;  %v1359_v51 = vld [vmem:[%s2425_s20 + $0x70] sm:$0xff] }
 0x262   : > { %1304 = vmatprep.subr.bf16.mxu1 %v2035_v4  ;;  %v1426_v4 = vunpack.c.l.s8.bf16 %v1370_v2  ;;  %v1430_v7 = vunpack.c.h.s8.bf16 %v1370_v2  ;;  %v1372_v2 = vld [vmem:[%s2425_s20 + $0xd8] sm:$0xff] }
 0x265   : > { %1305 = vmatpush1.bf16.msra.mxu1 %v2033_v6  ;;  %v1425_v6 = vunpack.c.l.s8.bf16 %v1369_v5 }
 0x266   : > { %1443 = vmatprep.subr.bf16.mxu1 %v1378_v8  ;;  %v1429_v8 = vunpack.c.h.s8.bf16 %v1369_v5  ;;  %v1371_v5 = vld [vmem:[%s2425_s20 + $0xd0] sm:$0xff] }
 0x313   : > { %v1871_v9 = vpop.f32.mrb[0].mxu1 }
 0x314   : > { %v1872_v10 = vpop.f32.mrb[1].mxu1 }
 0x315   : > { %v1873_v11 = vadd.f32 %v1872_v10, %v1871_v9  ;;  %v1874_v12 = vpop.f32.mrb[2].mxu1  ;;  %v1374_v9 = vld [vmem:[%s2425_s20 + $0xe8] sm:$0xff] }
 0x316   : > { %v1875_v13 = vpop.f32.mrb[3].mxu1  ;;  %v1434_v10 = vunpack.c.l.s8.bf16 %v1374_v9 }
 0x317   : > { %v1077_v26 = vadd.f32 %v1873_v11, %v1801_v23  ;;  %v1373_v11 = vld [vmem:[%s2425_s20 + $0xe0] sm:$0xff]  ;;  %v1438_v13 = vunpack.c.h.s8.bf16 %v1374_v9  ;;  %v1431_v9 = vunpack.c.h.s8.bf16 %v1371_v5 }
 0x318   : > { %v1433_v12 = vunpack.c.l.s8.bf16 %v1373_v11 }
 0x333   : > { %v1893_v14 = vpop.f32.mrb[4].mxu1 }
 0x334   : > { %v1894_v16 = vpop.f32.mrb[5].mxu1 }
 0x335   : > { %v1895_v17 = vadd.f32 %v1894_v16, %v1893_v14  ;;  %v1896_v18 = vpop.f32.mrb[6].mxu1  ;;  %v1437_v14 = vunpack.c.h.s8.bf16 %v1373_v11  ;;  %v1375_v11 = vld [vmem:[%s2425_s20 + $0xf0] sm:$0xff] }
 0x336   : > { %v1897_v19 = vpop.f32.mrb[7].mxu1 }
 0x337   : > { %v1251_v20 = vadd.f32 %v1895_v17, %v1818_v15  ;;  %v1348_v15 = vld [vmem:[%s2425_s20 + $0x18] sm:$0xff]  ;;  %v492_v17 = vld [vmem:[%s2722_s7 + $0x4] sm:$0x3] }
 0x338   : > { %v1380_v16 = vunpack.c.l.s8.bf16 %v1348_v15  ;;  %v1271_v18 = vrot.slane %v492_v17, %v2521_v31  ;;  %v1275_v19 = vrot.slane %v492_v17, %v2527_v33 }
 0x339   : > { %v1256_v21 = vmul.f32 0.5, %v1251_v20 }
 0x33b   : > { %v1257_v22 = vmul.f32 1.442695, %v1256_v21 }
 0x33d   : > { %2036 = vpow2.f32 %v1257_v22 }
 0x347   : > { %v2037_v25 = vpop.eup %2036 }
 0x348   : > { %v1260_v27 = vmul.f32 %v2037_v25, %v1259_v24 }
 0x34a   : > { %v1261_v29 = vadd.f32 %v1260_v27, %v1077_v26  ;;  %v1347_v27 = vld [vmem:[%s2425_s20 + $0x10] sm:$0xff] }
 0x34c   : > { %v1262_v34 = vpack.c.bf16 %v1261_v29, %v1261_v29 }
 0x34e   : > { %1839 = vmatmul.mubr.msk.bf16.vlgmr.msra.gmra.mrb[8].mxu1 %vm1298_vm0, %v1262_v34 }
 0x34f   : > { %1444 = vmatpush1.bf16.msra.mxu1 %v1377_v32  ;;  %v1379_v32 = vunpack.c.l.s8.bf16 %v1347_v27 }
 0x350   : > { %1445 = vmatprep.subr.bf16.mxu1 %v1382_v35  ;;  %v1384_v35 = vunpack.c.h.s8.bf16 %v1348_v15  ;;  %v1525_v15 = vld [vmem:[%s481_s24] sm:$0xf]  ;;  %s2112_s24 = scalar_lea.vmem %s2667_s25, 256 }
 0x351   : > { %v1530_v17 = vrot.slane %v1525_v15, %v2521_v31  ;;  %p2113_p11 = scmp.ne.s32.totalorder %s2667_s25, %s2112_s24  ;;  %p2120_p3 = scmp.lt.s32.totalorder %s2118_s13, %s2112_s24 }
 0x353   : > { %1446 = vmatpush1.bf16.msra.mxu1 %v1381_v37  ;;  %v1383_v37 = vunpack.c.h.s8.bf16 %v1347_v27  ;;  %p2114_p4 = pnand %p2113_p11, %p2760_p13  ;;  %p2121_p6 = por %p2120_p3, %p2119_p10 }
 0x354   : > { %1447 = vmatprep.subr.bf16.mxu1 %v1386_v38  ;;  %v1388_v38 = vunpack.c.l.s8.bf16 %v1352_v36 }
 0x355   : > { %p2115_p1 = pneg %p2114_p4 }
 0x357   : > { %1448 = vmatpush1.bf16.msra.mxu1 %v1385_v41  ;;  %v1387_v41 = vunpack.c.l.s8.bf16 %v1351_v39  ;;  %p2122_p0 = pnand %p2121_p6, %p2115_p1 }
 0x358   : > { %1449 = vmatprep.subr.bf16.mxu1 %v1390_v42  ;;  %v1392_v42 = vunpack.c.h.s8.bf16 %v1352_v36 }
 0x35b   : > { %1450 = vmatpush1.bf16.msra.mxu1 %v1389_v44  ;;  %v1391_v44 = vunpack.c.h.s8.bf16 %v1351_v39  ;;  %v1537_v39 = vsub.s32 2, %v2518_v30 }
 0x35c   : > { %1451 = vmatprep.subr.bf16.mxu1 %v1394_v45  ;;  %v1396_v45 = vunpack.c.l.s8.bf16 %v1356_v43 }
 0x35f   : > { %1452 = vmatpush1.bf16.msra.mxu1 %v1393_v47  ;;  %v1395_v47 = vunpack.c.l.s8.bf16 %v1355_v46 }
 0x360   : > { %1453 = vmatprep.subr.bf16.mxu1 %v1398_v48  ;;  %v1400_v48 = vunpack.c.h.s8.bf16 %v1356_v43 }
 0x363   : > { %1454 = vmatpush1.bf16.msra.mxu1 %v1397_v50  ;;  %v1399_v50 = vunpack.c.h.s8.bf16 %v1355_v46 }
 0x364   : > { %1455 = vmatprep.subr.bf16.mxu1 %v1402_v40  ;;  %v1404_v40 = vunpack.c.l.s8.bf16 %v1360_v49 }
 0x367   : > { %1456 = vmatpush1.bf16.msra.mxu1 %v1401_v52  ;;  %v1403_v52 = vunpack.c.l.s8.bf16 %v1359_v51 }
 0x368   : > { %1457 = vmatprep.subr.bf16.mxu1 %v1406_v53  ;;  %v1408_v53 = vunpack.c.h.s8.bf16 %v1360_v49 }
 0x36b   : > { %1458 = vmatpush1.bf16.msra.mxu1 %v1405_v55  ;;  %v1407_v55 = vunpack.c.h.s8.bf16 %v1359_v51 }
 0x36c   : > { %1459 = vmatprep.subr.bf16.mxu1 %v1410_v56  ;;  %v1412_v56 = vunpack.c.l.s8.bf16 %v1364_v54 }
 0x36f   : > { %1460 = vmatpush1.bf16.msra.mxu1 %v1409_v58  ;;  %v1411_v58 = vunpack.c.l.s8.bf16 %v1363_v57 }
 0x370   : > { %1461 = vmatprep.subr.bf16.mxu1 %v1414_v59  ;;  %v1416_v59 = vunpack.c.h.s8.bf16 %v1364_v54 }
 0x373   : > { %1462 = vmatpush1.bf16.msra.mxu1 %v1413_v61  ;;  %v1415_v61 = vunpack.c.h.s8.bf16 %v1363_v57 }
 0x374   : > { %1463 = vmatprep.subr.bf16.mxu1 %v1418_v62  ;;  %v1420_v62 = vunpack.c.l.s8.bf16 %v1368_v60 }
 0x377   : > { %1464 = vmatpush1.bf16.msra.mxu1 %v1417_v0  ;;  %v1419_v0 = vunpack.c.l.s8.bf16 %v1367_v63 }
 0x378   : > { %1465 = vmatprep.subr.bf16.mxu1 %v1422_v1  ;;  %v1424_v1 = vunpack.c.h.s8.bf16 %v1368_v60 }
 0x37b   : > { %1466 = vmatpush1.bf16.msra.mxu1 %v1421_v3  ;;  %v1423_v3 = vunpack.c.h.s8.bf16 %v1367_v63 }
 0x37c   : > { %1467 = vmatprep.subr.bf16.mxu1 %v1426_v4  ;;  %v1428_v4 = vunpack.c.l.s8.bf16 %v1372_v2 }
 0x37f   : > { %1468 = vmatpush1.bf16.msra.mxu1 %v1425_v6  ;;  %v1427_v6 = vunpack.c.l.s8.bf16 %v1371_v5 }
 0x380   : > { %1469 = vmatprep.subr.bf16.mxu1 %v1430_v7  ;;  %v1432_v7 = vunpack.c.h.s8.bf16 %v1372_v2 }
 0x383   : > { %1470 = vmatpush1.bf16.msra.mxu1 %v1429_v8  ;;  %v1376_v8 = vld [vmem:[%s2425_s20 + $0xf8] sm:$0xff]  ;;  %s2757_s20 = sld [smem:[#allocation15_spill]] }
 0x384   : > { %1471 = vmatprep.subr.bf16.mxu1 %v1434_v10  ;;  %v1436_v10 = vunpack.c.l.s8.bf16 %v1376_v8 }
 0x387   : > { %1472 = vmatpush1.bf16.msra.mxu1 %v1433_v12  ;;  %v1435_v12 = vunpack.c.l.s8.bf16 %v1375_v11 }
 0x388   : > { %1473 = vmatprep.subr.bf16.mxu1 %v1438_v13  ;;  %v1440_v13 = vunpack.c.h.s8.bf16 %v1376_v8 }
 0x389   : > { %s476_s21 = scalar_lea.vmem %s2757_s20, %s2775_s8  ;;  %s2759_s8 = sld [smem:[#allocation16_spill]] }
 0x38b   : > { %1474 = vmatpush1.bf16.msra.mxu1 %v1437_v14  ;;  %v1439_v14 = vunpack.c.h.s8.bf16 %v1375_v11 }
 0x38c   : > { %1484 = vmatprep.subr.bf16.mxu1 %v1380_v16  ;;  %v1551_v16 = vld [vmem:[%s476_s21] sm:$0xf] }
 0x38f   : > { %s2665_s19 = scalar_lea.hbm %s2759_s8, %s1854_s29 }
 0x421   : > { %v1336_v20 = vpop.f32.mrb[8].mxu1 }
 0x422   : > { %v1337_v21 = vadd.f32 %v1336_v20, %v1271_v18  ;;  %v1338_v22 = vpop.f32.mrb[9].mxu1  ;;  %v1534_v18 = vrot.slane %v1525_v15, %v2527_v33 }
 0x423   : > { %v1339_v23 = vadd.f32 %v1338_v22, %v1275_v19  ;;  %v1340_v24 = vpop.f32.mrb[10].mxu1  ;;  %v1556_v19 = vrot.slane %v1551_v16, %v2521_v31 }
 0x424   : > { %v1343_v25 = vmax.f32 %v1337_v21, 0.0  ;;  %v1341_v26 = vpop.f32.mrb[11].mxu1  ;;  %v1560_v21 = vrot.slane %v1551_v16, %v2527_v33 }
 0x425   : > { %v1344_v28 = vmax.f32 %v1339_v23, 0.0 }
 0x426   : > { %v2625_v34 = vpack.c.bf16 %v1343_v25, %v1343_v25 }
 0x427   : > { %v1442_v29 = vpack.c.bf16 %v1344_v28, %v1344_v28 }
 0x429   : > { %1475 = vmatprep.mubr.bf16.mxu1 %v1442_v29 }
 0x42a   : > { %1476 = vmatmul.mubr.bf16.vlgmr.msra.gmra.mrb[12].mxu1 %v2625_v34 }
 0x42b   : > { %1485 = vmatpush1.bf16.msra.mxu1 %v1379_v32  ;;  %1516 = vmatprep.mubr.bf16.mxu1 %v1442_v29 }
 0x42c   : > { %1486 = vmatprep.subr.bf16.mxu1 %v1384_v35 }
 0x42f   : > { %1487 = vmatpush1.bf16.msra.mxu1 %v1383_v37 }
 0x430   : > { %1488 = vmatprep.subr.bf16.mxu1 %v1388_v38 }
 0x433   : > { %1489 = vmatpush1.bf16.msra.mxu1 %v1387_v41  ;;  %v1541_v41 = vsub.s32 3, %v2518_v30 }
 0x434   : > { %1490 = vmatprep.subr.bf16.mxu1 %v1392_v42  ;;  %v1538_v42 = vrot.slane %v1525_v15, %v1537_v39 }
 0x435   : > { %v1542_v43 = vrot.slane %v1525_v15, %v1541_v41  ;;  %v1568_v46 = vrot.slane %v1551_v16, %v1541_v41 }
 0x437   : > { %1491 = vmatpush1.bf16.msra.mxu1 %v1391_v44  ;;  %v1564_v44 = vrot.slane %v1551_v16, %v1537_v39 }
 0x438   : > { %1492 = vmatprep.subr.bf16.mxu1 %v1396_v45 }
 0x43b   : > { %1493 = vmatpush1.bf16.msra.mxu1 %v1395_v47 }
 0x43c   : > { %1494 = vmatprep.subr.bf16.mxu1 %v1400_v48 }
 0x43f   : > { %1495 = vmatpush1.bf16.msra.mxu1 %v1399_v50 }
 0x440   : > { %1496 = vmatprep.subr.bf16.mxu1 %v1404_v40 }
 0x443   : > { %1497 = vmatpush1.bf16.msra.mxu1 %v1403_v52 }
 0x444   : > { %1498 = vmatprep.subr.bf16.mxu1 %v1408_v53 }
 0x447   : > { %1499 = vmatpush1.bf16.msra.mxu1 %v1407_v55 }
 0x448   : > { %1500 = vmatprep.subr.bf16.mxu1 %v1412_v56 }
 0x44b   : > { %1501 = vmatpush1.bf16.msra.mxu1 %v1411_v58 }
 0x44c   : > { %1502 = vmatprep.subr.bf16.mxu1 %v1416_v59 }
 0x44f   : > { %1503 = vmatpush1.bf16.msra.mxu1 %v1415_v61 }
 0x450   : > { %1504 = vmatprep.subr.bf16.mxu1 %v1420_v62 }
 0x453   : > { %1505 = vmatpush1.bf16.msra.mxu1 %v1419_v0 }
 0x454   : > { %1506 = vmatprep.subr.bf16.mxu1 %v1424_v1 }
 0x457   : > { %1507 = vmatpush1.bf16.msra.mxu1 %v1423_v3 }
 0x458   : > { %1508 = vmatprep.subr.bf16.mxu1 %v1428_v4 }
 0x45b   : > { %1509 = vmatpush1.bf16.msra.mxu1 %v1427_v6 }
 0x45c   : > { %1510 = vmatprep.subr.bf16.mxu1 %v1432_v7 }
 0x45f   : > { %1511 = vmatpush1.bf16.msra.mxu1 %v1431_v9 }
 0x460   : > { %1512 = vmatprep.subr.bf16.mxu1 %v1436_v10 }
 0x463   : > { %1513 = vmatpush1.bf16.msra.mxu1 %v1435_v12 }
 0x464   : > { %1514 = vmatprep.subr.bf16.mxu1 %v1440_v13 }
 0x467   : > { %1515 = vmatpush1.bf16.msra.mxu1 %v1439_v14 }
 0x46a   : > { %1517 = vmatmul.mubr.bf16.vlgmr.msra.gmra.mrb[16].mxu1 %v2625_v34 }
 0x4fd   : > { %v1477_v20 = vpop.f32.mrb[12].mxu1 }
 0x4fe   : > { %v1547_v22 = vmul.f32 %v1530_v17, %v1477_v20  ;;  %v1479_v23 = vpop.f32.mrb[13].mxu1 }
 0x4ff   : > { %v1548_v24 = vmul.f32 %v1534_v18, %v1479_v23  ;;  %v1481_v25 = vpop.f32.mrb[14].mxu1 }
 0x500   : > { %v1573_v26 = vadd.f32 %v1556_v19, %v1547_v22  ;;  %v1482_v27 = vpop.f32.mrb[15].mxu1 }
 0x501   : > { %v1574_v28 = vadd.f32 %v1560_v21, %v1548_v24 }
 0x502   : > { %v1840_v29 = vmul.f32 -1.442695, %v1573_v26 }
 0x503   : > { %v1841_v32 = vmul.f32 -1.442695, %v1574_v28 }
 0x504   : > { %2038 = vpow2.f32 %v1840_v29 }
 0x505   : > { %2040 = vpow2.f32 %v1841_v32 }
 0x50e   : > { %v2039_v34 = vpop.eup %2038 }
 0x50f   : > { %v2041_v35 = vpop.eup %2040  ;;  %v1589_v36 = vadd.f32 1.0, %v2039_v34 }
 0x510   : > { %v1590_v37 = vadd.f32 1.0, %v2041_v35 }
 0x511   : > { %2042 = vrcp.f32 %v1589_v36 }
 0x512   : > { %2044 = vrcp.f32 %v1590_v37 }
 0x51b   : > { %v2043_v31 = vpop.eup %2042 }
 0x51c   : > { %v2045_v33 = vpop.eup %2044 }
 0x51d   : > { %v1852_v38 = vpack.c.bf16 %v2045_v33, %v2043_v31 }
 0x51f   : > { %1617 = vst [vmem:[%s2655_s23] sm:$0xff] %v1852_v38 }
 0x53d   : > { %v1518_v45 = vpop.f32.mrb[16].mxu1 }
 0x53e   : > { %v1549_v47 = vmul.f32 %v1538_v42, %v1518_v45  ;;  %v1520_v48 = vpop.f32.mrb[17].mxu1 }
 0x53f   : > { %v1550_v49 = vmul.f32 %v1542_v43, %v1520_v48  ;;  %v1522_v50 = vpop.f32.mrb[18].mxu1 }
 0x540   : > { %v1575_v40 = vadd.f32 %v1564_v44, %v1549_v47  ;;  %v1523_v51 = vpop.f32.mrb[19].mxu1 }
 0x541   : > { %v1576_v52 = vadd.f32 %v1568_v46, %v1550_v49 }
 0x542   : > { %v1842_v53 = vmul.f32 -1.442695, %v1575_v40 }
 0x543   : > { %v1843_v54 = vmul.f32 -1.442695, %v1576_v52 }
 0x544   : > { %2046 = vpow2.f32 %v1842_v53 }
 0x545   : > { %2048 = vpow2.f32 %v1843_v54 }
 0x54e   : > { %v2047_v30 = vpop.eup %2046 }
 0x54f   : > { %v2049_v55 = vpop.eup %2048  ;;  %v1591_v56 = vadd.f32 1.0, %v2047_v30 }
 0x550   : > { %v1592_v57 = vadd.f32 1.0, %v2049_v55 }
 0x551   : > { %2050 = vrcp.f32 %v1591_v56 }
 0x552   : > { %2052 = vrcp.f32 %v1592_v57 }
 0x55b   : > { %v2051_v58 = vpop.eup %2050 }
 0x55c   : > { %v2053_v59 = vpop.eup %2052 }
 0x55d   : > { %v1853_v60 = vpack.c.bf16 %v2053_v59, %v2051_v58 }
 0x55f   : > { %1618 = vst [vmem:[%s2655_s23 + $0x8] sm:$0xff] %v1853_v60 }
 0x560   : > { %2125 = shalt.err (!%p2122_p0)
}
 0x561   : > { %s2126_s27 = scalar_lea.hbm %s2665_s19, 256  ;;  %s2130_s26 = scalar_lea.hbm %s2759_s8, 512 }
 0x562   : > { %p2127_p2 = scmp.ne.s32.totalorder %s2665_s19, %s2126_s27  ;;  %p2131_p5 = scmp.lt.u32.totalorder %s2665_s19, %s2759_s8 }
 0x563   : > { %p2132_p8 = scmp.lt.u32.totalorder %s2130_s26, %s2126_s27  ;;  %p2134_p11 = scmp.lt.u32.totalorder %s2126_s27, %s2665_s19 }
 0x564   : > { %p2128_p7 = pnand %p2127_p2, %p2760_p13 }
 0x565   : > { %p2133_p9 = por %p2132_p8, %p2131_p5 }
 0x566   : > { %p2129_p12 = pneg %p2128_p7 }
 0x567   : > { %p2135_p4 = por %p2134_p11, %p2133_p9 }
 0x569   : > { %p2136_p1 = pnand %p2135_p4, %p2129_p12 }
 0x56b   : > { %2139 = shalt.err (!%p2136_p1)
}
 0x56c   : > { %1917 = dma.vmem_to_hbm [thread:$0]  (%p2760_p13), %s2667_s25, 256, %s2665_s19, %s1620_s10  }
 0x56d PF: > { %s2761_s12 = sld [smem:[#allocation11_spill]]  ;;  %s2762_s28 = sld [smem:[#allocation14_spill]] }
 0x56e   : > { %s2763_s24 = sld [smem:[#allocation12_spill]] }
 0x573   : > { %s1648_s16 = sand.u32 1, %s2761_s12   ;;  %p2764_p10 = scmp.ne.s32.totalorder %s2762_s28, 0 }
 0x574   : > { %p2765_p3 = scmp.ge.s32.totalorder %s2763_s24, 2  ;;  %s1649_s22 = scalar_lea.sflag [#allocation4], %s1648_s16 }
 0x576   : > { %p1928_p6 = pnand %p2765_p3, %p2764_p10 }
 0x578   : > { %2173 = dma.done.wait (!%p1928_p6), %s1649_s22, 256  }
 0x579   : > { %2175 = vsyncadd (!%p1928_p6), %s1649_s22, 4294967040  ;;  %s27_s27 = sadd.s32 1, %s2763_s24   ;;  %s2766_s13 = smov %s2182_s14 }
 0x57a   : > { %p24_p0 = scmp.ge.s32.totalorder %s27_s27, 4   ;;  %s2767_s14 = smov %s2186_s15 }
 0x57b   : > { %s2768_s15 = smov %s2382_s18  ;;  %s2769_s16 = smov %s2194_s17 }
 0x57c   : > { %s2770_s17 = smov %s2773_s11  ;;  %s2771_s18 = smov %s27_s27 }
 0x57d   :  { %26 = sbr.rel (!%p24_p0) target bundleno = 10 (0xa), region = 122 }
 0x584   :  { %1654 = vsyncpa [#allocation3], 1 }
 0x585   :  { %1656 = vsyncpa [#allocation3 + $0x1], 1 }
 0x586   :  { %1657 = vsyncpa [#allocation6], 1 }
 0x587   :  { %1659 = vsyncpa [#allocation6 + $0x1], 1 }
 0x588   :  { %1660 = vsyncpa [#allocation4], 1 }
 0x589   :  { %1662 = vsyncpa [#allocation4 + $0x1], 1 }

</bundles_post_ra>
